<compile_context>
chip_gen: v7x
topology: tpu7x:2x2x1
jax: 0.10.0
libtpu: 0.0.40
codegen_flags: <defaults>
</compile_context>

<pallas_src>
import jax
import jax.numpy as jnp
import numpy as np
from jax import lax
from jax.experimental import pallas as pl
from jax.experimental.pallas import tpu as pltpu

LANE = 128  # lane width; also the time-chunk size of the recurrence kernel


# --------------------------------------------------------------------------
# Kernels
# --------------------------------------------------------------------------
def coupled_fourier_dense_kernel(s_ref, w_ref, phi_ref, mt_ref, b_ref, o_ref):
    # s_ref  : [1,  tt]   times (lane-dense)
    # w_ref  : [K2, 1]    flattened frequencies  (K2 = D*H*2)
    # phi_ref: [K2, 1]    flattened phases
    # mt_ref : [D,  K2]   fused (A * selector * W^T) matrix
    # b_ref  : [D,  1]    bias column
    # o_ref  : [D,  tt]   output tile (time on lanes)
    s = s_ref[...]                                      # [1, tt]
    phase = w_ref[...] * s + phi_ref[...]               # [K2, tt] broadcast
    c = jnp.cos(phase)                                  # VPU polynomial (binding slot)
    out = jnp.dot(mt_ref[...], c,
                  preferred_element_type=jnp.float32)   # [D, tt] on MXU (idle slot)
    o_ref[...] = (out + b_ref[...]).astype(o_ref.dtype)


def coupled_fourier_recurrence_kernel(s_ref, w_ref, phi_ref, cd_ref, sd_ref,
                                      mt_ref, b_ref, o_ref):
    # Uniform-dt fast path.  cd/sd = cos/sin(w * 128*dt), shape [K2, 1].
    w = w_ref[...]
    phi = phi_ref[...]
    cd = cd_ref[...]
    sd = sd_ref[...]
    mt = mt_ref[...]
    b = b_ref[...]

    # Exact phases for the first 128-lane chunk of this tile.
    ph0 = w * s_ref[:, 0:LANE] + phi                    # [K2, 128]
    c0 = jnp.cos(ph0)
    s0 = jnp.sin(ph0)

    n_chunks = o_ref.shape[-1] // LANE

    def body(j, carry):
        c, sn = carry
        off = pl.multiple_of(j * LANE, LANE)
        out = jnp.dot(mt, c, preferred_element_type=jnp.float32) + b
        o_ref[:, pl.ds(off, LANE)] = out.astype(o_ref.dtype)
        # Advance all phases by 128*dt (angle-addition; pure VPU FMAs).
        c_n = c * cd - sn * sd
        s_n = sn * cd + c * sd
        return (c_n, s_n)

    lax.fori_loop(0, n_chunks, body, (c0, s0))


# --------------------------------------------------------------------------
# Wrapper
# --------------------------------------------------------------------------
def _small_forward(s, A, phi, w, W, b):
    # Fused pure-XLA path for toy sizes.
    s_ = s.astype(jnp.float32)[:, None, None, None]                 # [T,1,1,1]
    pre = (A[None] * jnp.cos(w[None] * s_ + phi[None])).sum((2, 3))  # [T, D]
    return pre @ W.T.astype(jnp.float32) + b.astype(jnp.float32)


def _detect_uniform_dt(s):
    """Return dt if s is (concretely) uniformly spaced, else None."""
    try:
        s_np = np.asarray(jax.device_get(s), dtype=np.float64)
    except Exception:
        return None  # traced value; caller may pass uniform_dt explicitly
    if s_np.ndim != 1 or s_np.shape[0] < 3:
        return None
    d = np.diff(s_np)
    dt = float(d.mean())
    if not np.isfinite(dt):
        return None
    tol = 8.0 * np.finfo(np.float32).eps * max(1.0, float(np.max(np.abs(s_np))))
    if float(np.max(np.abs(d - dt))) <= tol:
        return dt
    return None


def coupled_fourier_forward(s, A, phi, w, W, b, *, tile_t=8192,
                            uniform_dt=None, force_pallas=False,
                            small_threshold=1_000_000):
    """s: scalar or [T]; A/phi/w: [dim, H, 2]; W: [dim, dim]; b: [dim].

    Returns [T, dim] ([1, dim] for scalar s), matching the PyTorch module.
    """
    s = jnp.asarray(s, jnp.float32)
    if s.ndim == 0:
        s = s.reshape(1)
    T = s.shape[0]
    D, H, _ = A.shape
    K2 = D * H * 2

    # Toy-size dispatch: plain XLA beats pallas_call fixed cost here.
    if not force_pallas and T * K2 < small_threshold:
        return _small_forward(s, A, phi, w, W, b)

    # ---- fold A, harmonic-sum selector and W^T into one [D, K2] matrix ----
    # Flatten (d, h, k) row-major; row j belongs to state dim d(j) = j // (2H).
    A_flat = A.reshape(K2).astype(jnp.float32)                       # [K2]
    w_col = w.reshape(K2, 1).astype(jnp.float32)                     # [K2, 1]
    phi_col = phi.reshape(K2, 1).astype(jnp.float32)                 # [K2, 1]
    Wt_rows = jnp.repeat(W.T.astype(jnp.float32), 2 * H, axis=0)     # [K2, D]
    mT = (A_flat[:, None] * Wt_rows).T                               # [D, K2]
    b_col = b.reshape(D, 1).astype(jnp.float32)                      # [D, 1]

    # ---- tile selection: big tiles, VMEM-capped, >= 2 grid steps (v7x) ----
    T128 = ((T + LANE - 1) // LANE) * LANE
    vmem_budget = 8 * 1024 * 1024                       # for [K2, tt] intermediates
    tt_vmem = max(LANE, (vmem_budget // (8 * K2)) // LANE * LANE)
    tt_2step = max(LANE, (T128 // 2) // LANE * LANE)    # keep >=2 steps for megacore
    tt = int(max(LANE, min(tile_t, tt_vmem, tt_2step, T128) // LANE * LANE))
    Tp = ((T + tt - 1) // tt) * tt
    grid = (Tp // tt,)

    s_pad = jnp.zeros((Tp,), jnp.float32).at[:T].set(s)
    s2 = s_pad.reshape(1, Tp)                           # time on lanes

    # Explicit scoped-VMEM limit (v5e default is only 16 MiB scoped).
    need = 4 * (2 * tt + 2 * D * tt + 4 * K2 + D * K2 + D) + 8 * K2 * tt
    vmem_limit = int(min(40 * 1024 * 1024, max(16 * 1024 * 1024, 2 * need)))
    cparams = pltpu.CompilerParams(dimension_semantics=("parallel",),
                                   vmem_limit_bytes=vmem_limit)

    # Resident params use a constant (0, 0) index map; at K2 in the thousands
    # they could additionally be marked single-buffered (pipeline_mode) to
    # halve their footprint — trivial at this K2, so left default.
    s_spec = pl.BlockSpec((1, tt), lambda i: (0, i))
    col_spec = pl.BlockSpec((K2, 1), lambda i: (0, 0))
    mt_spec = pl.BlockSpec((D, K2), lambda i: (0, 0))
    b_spec = pl.BlockSpec((D, 1), lambda i: (0, 0))
    out_spec = pl.BlockSpec((D, tt), lambda i: (0, i))
    out_shape = jax.ShapeDtypeStruct((D, Tp), jnp.float32)

    dt = uniform_dt if uniform_dt is not None else _detect_uniform_dt(s)

    if dt is not None and tt >= 2 * LANE:
        # Uniform-spacing fast path: cos/sin once per tile, then 4 FMAs/elem.
        cd = jnp.cos(w_col * jnp.float32(LANE * dt))
        sd = jnp.sin(w_col * jnp.float32(LANE * dt))
        cost = pl.CostEstimate(
            flops=int(Tp * K2 * 6 + 2 * Tp * K2 * D + Tp * D
                      + (Tp // tt) * K2 * LANE * 24),
            transcendentals=0,  # cos/sin are VPU polynomials, not EUP
            bytes_accessed=int(4 * (Tp + D * Tp + 4 * K2 + D * K2 + D)),
        )
        out_T = pl.pallas_call(
            coupled_fourier_recurrence_kernel,
            out_shape=out_shape,
            grid=grid,
            in_specs=[s_spec, col_spec, col_spec, col_spec, col_spec,
                      mt_spec, b_spec],
            out_specs=out_spec,
            compiler_params=cparams,
            cost_estimate=cost,
        )(s2, w_col, phi_col, cd, sd, mT, b_col)
    else:
        cost = pl.CostEstimate(
            flops=int(Tp * K2 * 14 + 2 * Tp * K2 * D + Tp * D),
            transcendentals=0,  # cos is VPU polynomial work, not EUP
            bytes_accessed=int(4 * (Tp + D * Tp + 2 * K2 + D * K2 + D)),
        )
        out_T = pl.pallas_call(
            coupled_fourier_dense_kernel,
            out_shape=out_shape,
            grid=grid,
            in_specs=[s_spec, col_spec, col_spec, mt_spec, b_spec],
            out_specs=out_spec,
            compiler_params=cparams,
            cost_estimate=cost,
        )(s2, w_col, phi_col, mT, b_col)

    # Back to the module's [T, dim] layout; drop time padding.
    return out_T.T[:T, :]


# --------------------------------------------------------------------------
# Pure-JAX reference mirroring the PyTorch loop
# --------------------------------------------------------------------------
def reference_forward(s, A, phi, w, W, b):
    def one(s_):
        pre = (A[:, :, 0] * jnp.cos(w[:, :, 0] * s_ + phi[:, :, 0])
               + A[:, :, 1] * jnp.cos(w[:, :, 1] * s_ + phi[:, :, 1])).sum(1)
        return pre @ W.T + b
    return jax.vmap(one)(s)


if __name__ == "__main__":
    dim = 2
    n_harmonics = 8      # module draws randint(2, 20); fixed here for determinism

    key = jax.random.PRNGKey(0)
    k_A, k_phi, k_w, k_W, k_b, k_s = jax.random.split(key, 6)

    # Deterministic parameter init matching the module's distributions.
    A = jax.random.uniform(k_A, (dim, n_harmonics, 2), jnp.float32, -10.0, 10.0)
    phi = jax.random.uniform(k_phi, (dim, n_harmonics, 2), jnp.float32, -1.0, 1.0)
    w = jax.random.uniform(k_w, (dim, n_harmonics, 2), jnp.float32, -20.0, 20.0)
    # nn.Linear(dim, dim) default init: U(-1/sqrt(dim), 1/sqrt(dim)).
    bound = 1.0 / (dim ** 0.5)
    W = jax.random.uniform(k_W, (dim, dim), jnp.float32, -bound, bound)
    b = jax.random.uniform(k_b, (dim,), jnp.float32, -bound, bound)

    # 1) non-uniform times -> dense-cos kernel (padding + 2-step grid exercised)
    T1 = 1000
    s1 = jax.random.uniform(k_s, (T1,), jnp.float32, 0.0, 1.0)
    out1 = jax.block_until_ready(
        coupled_fourier_forward(s1, A, phi, w, W, b, force_pallas=True))
    ref1 = reference_forward(s1, A, phi, w, W, b)
    assert out1.shape == (T1, dim)
    assert jnp.allclose(out1, ref1, atol=2e-3, rtol=1e-3), "dense path mismatch"

    # 2) uniform t_span -> angle-addition recurrence fast path
    T2 = 2048
    s_uniform = jnp.arange(T2, dtype=jnp.float32) * jnp.float32(1.0 / 1024.0)
    out2 = jax.block_until_ready(
        coupled_fourier_forward(s_uniform, A, phi, w, W, b, force_pallas=True))
    ref2 = reference_forward(s_uniform, A, phi, w, W, b)
    assert out2.shape == (T2, dim)
    assert jnp.allclose(out2, ref2, atol=2e-2, rtol=1e-3), "recurrence path mismatch"

    # 3) toy-size dispatch (pure-XLA path) + scalar-s branch
    out3 = jax.block_until_ready(coupled_fourier_forward(s1, A, phi, w, W, b))
    assert jnp.allclose(out3, ref1, atol=2e-3, rtol=1e-3), "small path mismatch"
    out4 = jax.block_until_ready(
        coupled_fourier_forward(jnp.float32(0.3), A, phi, w, W, b))
    assert out4.shape == (1, dim)

    print("KERNEL_OK")
</pallas_src>

<mosaic_0001>
module attributes {stable_mosaic.version = 11 : i64} {
  func.func @coupled_fourier_dense_kernel(%arg0: i32, %arg1: memref<1x512xf32, #tpu.memory_space<vmem>>, %arg2: memref<32x1xf32, #tpu.memory_space<vmem>>, %arg3: memref<32x1xf32, #tpu.memory_space<vmem>>, %arg4: memref<2x32xf32, #tpu.memory_space<vmem>>, %arg5: memref<2x1xf32, #tpu.memory_space<vmem>>, %arg6: memref<2x512xf32, #tpu.memory_space<vmem>>) attributes {dimension_semantics = [#tpu.dimension_semantics<parallel>], iteration_bounds = array<i64: 2>, scalar_prefetch = 0 : i64, scratch_operands = 0 : i64, tpu.core_type = #tpu.core_type<tc>, window_params = [{transform_indices = @transform_0, window_bounds = array<i64: 1, 512>}, {pipeline_mode = #tpu.pipeline_mode<synchronous>, transform_indices = @transform_1, window_bounds = array<i64: 32, 1>}, {pipeline_mode = #tpu.pipeline_mode<synchronous>, transform_indices = @transform_2, window_bounds = array<i64: 32, 1>}, {pipeline_mode = #tpu.pipeline_mode<synchronous>, transform_indices = @transform_3, window_bounds = array<i64: 2, 32>}, {pipeline_mode = #tpu.pipeline_mode<synchronous>, transform_indices = @transform_4, window_bounds = array<i64: 2, 1>}, {transform_indices = @transform_5, window_bounds = array<i64: 2, 512>}]} {
    %c0 = arith.constant 0 : index
    %c0_0 = arith.constant 0 : index
    %0 = vector.load %arg1[%c0, %c0_0] : memref<1x512xf32, #tpu.memory_space<vmem>>, vector<1x512xf32>
    %c0_1 = arith.constant 0 : index
    %c0_2 = arith.constant 0 : index
    %1 = vector.load %arg2[%c0_1, %c0_2] : memref<32x1xf32, #tpu.memory_space<vmem>>, vector<32x1xf32>
    %2 = vector.broadcast %1 : vector<32x1xf32> to vector<32x512xf32>
    %3 = vector.broadcast %0 : vector<1x512xf32> to vector<32x512xf32>
    %4 = arith.mulf %2, %3 : vector<32x512xf32>
    %c0_3 = arith.constant 0 : index
    %c0_4 = arith.constant 0 : index
    %5 = vector.load %arg3[%c0_3, %c0_4] : memref<32x1xf32, #tpu.memory_space<vmem>>, vector<32x1xf32>
    %6 = vector.broadcast %5 : vector<32x1xf32> to vector<32x512xf32>
    %7 = arith.addf %4, %6 : vector<32x512xf32>
    %8 = math.cos %7 : vector<32x512xf32>
    %c0_5 = arith.constant 0 : index
    %c0_6 = arith.constant 0 : index
    %9 = vector.load %arg4[%c0_5, %c0_6] : memref<2x32xf32, #tpu.memory_space<vmem>>, vector<2x32xf32>
    %cst = arith.constant dense<0.000000e+00> : vector<2x512xf32>
    %10 = tpu.matmul %9, %8, %cst {dimension_numbers = #tpu.dot_dimension_numbers<[1], [0], [0], [1], [0, 0, 1, 1], [], []>} : vector<2x32xf32>, vector<32x512xf32>, vector<2x512xf32> -> vector<2x512xf32>
    %c0_7 = arith.constant 0 : index
    %c0_8 = arith.constant 0 : index
    %11 = vector.load %arg5[%c0_7, %c0_8] : memref<2x1xf32, #tpu.memory_space<vmem>>, vector<2x1xf32>
    %12 = vector.broadcast %11 : vector<2x1xf32> to vector<2x512xf32>
    %13 = arith.addf %10, %12 : vector<2x512xf32>
    %c0_9 = arith.constant 0 : index
    %c0_10 = arith.constant 0 : index
    %14 = vector.load %arg6[%c0_9, %c0_10] : memref<2x512xf32, #tpu.memory_space<vmem>>, vector<2x512xf32>
    tpu.vector_store %arg6[%c0_9, %c0_10], %13 {strides = array<i32>} : memref<2x512xf32, #tpu.memory_space<vmem>>, vector<2x512xf32>,
    return
  }
  func.func @transform_0(%arg0: i32) -> (i32, i32) {
    %c0_i32 = arith.constant 0 : i32
    %c0_i32_0 = arith.constant 0 : i32
    return %c0_i32, %arg0 : i32, i32
  }
  func.func @transform_1(%arg0: i32) -> (i32, i32) {
    %c0_i32 = arith.constant 0 : i32
    %c0_i32_0 = arith.constant 0 : i32
    %c0_i32_1 = arith.constant 0 : i32
    return %c0_i32, %c0_i32_0 : i32, i32
  }
  func.func @transform_2(%arg0: i32) -> (i32, i32) {
    %c0_i32 = arith.constant 0 : i32
    %c0_i32_0 = arith.constant 0 : i32
    %c0_i32_1 = arith.constant 0 : i32
    return %c0_i32, %c0_i32_0 : i32, i32
  }
  func.func @transform_3(%arg0: i32) -> (i32, i32) {
    %c0_i32 = arith.constant 0 : i32
    %c0_i32_0 = arith.constant 0 : i32
    %c0_i32_1 = arith.constant 0 : i32
    return %c0_i32, %c0_i32_0 : i32, i32
  }
  func.func @transform_4(%arg0: i32) -> (i32, i32) {
    %c0_i32 = arith.constant 0 : i32
    %c0_i32_0 = arith.constant 0 : i32
    %c0_i32_1 = arith.constant 0 : i32
    return %c0_i32, %c0_i32_0 : i32, i32
  }
  func.func @transform_5(%arg0: i32) -> (i32, i32) {
    %c0_i32 = arith.constant 0 : i32
    %c0_i32_0 = arith.constant 0 : i32
    return %c0_i32, %arg0 : i32, i32
  }
}

</mosaic_0001>

<bundles_post_ra>
// kernel: tpu_custom_call.1
= control target key start
LH: loop header
LB: loop body
LE: loop exit
PB: predicated region body
PF: predicated region fallthrough
CT: control target
= control target key end

     0   :  { %10 = vsyncpa [#allocation3], 0  ;;  %s4566_s0 = inlined_call_operand.vmem [shape: f32[1,1024], index: 0, kind: input, shape index: {}]   ;;  %s4567_s1 = inlined_call_operand.vmem [shape: f32[32,1], index: 1, kind: input, shape index: {}]   ;;  %s4568_s2 = inlined_call_operand.vmem [shape: f32[32,1], index: 2, kind: input, shape index: {}]   ;;  %s4569_s3 = inlined_call_operand.vmem [shape: f32[2,32], index: 3, kind: input, shape index: {}]   ;;  %s4570_s4 = inlined_call_operand.vmem [shape: f32[2,1], index: 4, kind: input, shape index: {}]   ;;  %s4571_s5 = inlined_call_operand.hbm [shape: f32[2,1024], index: 5, kind: output, shape index: {}]  }
   0x1   :  { %12 = vsyncpa [#allocation3 + $0x1], 0  ;;  %s2596_s18 = smov 0   ;;  %s2598_s19 = smov 0  }
   0x2   :  { %s2600_s20 = smov 0   ;;  %s2602_s21 = smov 0  }
   0x3 LB: > { %s2617_s22 = sadd.s32 4294967295, %s2554_s21   ;;  %s2220_s23 = sadd.s32 4294967294, %s2554_s21   ;;  %s2554_s21 = sphi %s2602_s21, %s4743_s21   ;;  %s2550_s20 = sphi %s2600_s20, %s4742_s20   ;;  %s2546_s19 = sphi %s2598_s19, %s4741_s19   ;;  %s2542_s18 = sphi %s2596_s18, %s4740_s18  }
   0x4   : > { %s2621_s24 = sadd.s32 1, %s2554_s21   ;;  %s135_s25 = sadd.s32 1, %s2550_s20 }
   0x5   : > { %s132_s26 = ssub.s32 %s2554_s21, %s2621_s24  ;;  %p145_p0 = scmp.ne.s32.totalorder %s2550_s20, %s2546_s19 }
   0x6   : > { %p133_p1 = scmp.eq.s32.totalorder %s132_s26, 0  ;;  %p146_p2 = scmp.eq.s32.totalorder %s2617_s22, 1 }
   0x7   : > { %p151_p3 = scmp.ne.s32.totalorder %s2546_s19, %s2542_s18  ;;  %p152_p4 = scmp.eq.s32.totalorder %s2220_s23, 1 }
   0x8   : > { %s2632_s27 = scalar_select %p133_p1, %s2550_s20, %s135_s25  }
   0x9   : > { %p2634_p5 = por %p146_p2, %p145_p0  ;;  %p2638_p6 = por %p152_p4, %p151_p3 }
   0xa   : > { %p2223_p7 = scmp.ge.s32.totalorder %s2554_s21, 1  ;;  %p190_p8 = scmp.lt.s32.totalorder %s2554_s21, 3 }
   0xc   : > { %p191_p9 = pnand %p2223_p7, %p190_p8 }
   0xe   : > { %194 = sbr.rel (%p191_p9) target bundleno = 823 (0x337), region = 40 }
  0x15   : > { %v285_v0 = vld [vmem:[%s4568_s2] sm:$0xff]  ;;  %v2556_v2 = vmov 0   ;;  %v286_v3 = vld [vmem:[%s4568_s2 + $0x8] sm:$0xff]  ;;  %v227_v5 = vld [vmem:[%s4567_s1 + $0x18] sm:$0xff]  ;;  %s2225_s7 = sshll.u32 %s2617_s22, 2  ;;  %v249_v10 = vlaneseq  ;;  %s214_s13 = sand.u32 1, %s2546_s19  }
  0x16   : > { %v224_v1 = vld [vmem:[%s4567_s1] sm:$0xff]  ;;  %2427 = vset.pattern.permute.xlu1 %v2556_v2  ;;  %2426 = vset.pattern.permute.xlu0 %v2556_v2  ;;  %v225_v4 = vld [vmem:[%s4567_s1 + $0x8] sm:$0xff]  ;;  %v226_v6 = vld [vmem:[%s4567_s1 + $0x10] sm:$0xff]  ;;  %p218_p10 = scmp.lt.s32.totalorder %s2225_s7, 7  ;;  %s2224_s14 = sshll.u32 %s214_s13, 3 }
  0x17   : > { %291 = vperm.xlu1 %2427, %v285_v0   ;;  %230 = vperm.xlu0 %2426, %v224_v1   ;;  %v288_v7 = vld [vmem:[%s4568_s2 + $0x18] sm:$0xff]  ;;  %v287_v8 = vld [vmem:[%s4568_s2 + $0x10] sm:$0xff]  ;;  %v1974_v9 = vld [vmem:[%s4570_s4] sm:$0x3]  ;;  %v2672_v11 = vshrl.u32 %v249_v10, 7  ;;  %s2297_s15 = sshll.u32 %s2617_s22, 7 }
  0x18   : > { %s4745_s7 = smov (!%p218_p10, %s2225_s7), 7  ;;  %s216_s16 = scalar_lea.vmem [#allocation2], %s2224_s14 }
  0x19   : > { %4634 = vst [vmem:[#allocation5_spill] sm:$0xff] %v2672_v11  ;;  %s220_s10 = scalar_lea.vmem %s4566_s0, %s4745_s7  ;;  %v251_v12 = vsub.s32 0, %v2672_v11  ;;  %v259_v13 = vsub.s32 2, %v2672_v11  ;;  %v255_v19 = vsub.s32 1, %v2672_v11  ;;  %v263_v24 = vsub.s32 3, %v2672_v11  ;;  %s2164_s17 = sshll.u32 %s216_s16, 4  ;;  %s4526_s17 = int_to_ptr.vmem [resolvable:$true] %s2164_s17 }
  0x1a   : > { %v223_v14 = vld [vmem:[%s220_s10] sm:$0xf]  ;;  %v4657_v11 = vmov 683565275   ;;  %s4524_s26 = scalar_lea.hbm %s4571_s5, %s2297_s15  ;;  %s2150_s30 = scalar_lea.sflag [#allocation3], %s214_s13 }
  0x1b   : > { %296 = vperm.xlu1 %2427, %v286_v3   ;;  %235 = vperm.xlu0 %2426, %v225_v4   ;;  %v252_v15 = vrot.slane %v223_v14, %v251_v12  ;;  %v260_v16 = vrot.slane %v223_v14, %v259_v13  ;;  %v2685_v26 = vrot.slane %v223_v14, %v255_v19  ;;  %s2492_s6 = scalar_lea.vmem %s4526_s17, 128  ;;  %s2565_s22 = smov [#allocation2]  }
  0x1c   : > { %v2687_v30 = vrot.slane %v223_v14, %v263_v24  ;;  %p2493_p11 = scmp.ne.s32.totalorder %s4526_s17, %s2492_s6  ;;  %s2496_s7 = sshll.u32 %s2565_s22, 4  ;;  %s2497_s7 = int_to_ptr.vmem [resolvable:$false] %s2496_s7 }
  0x1d   : > { %s2498_s8 = scalar_lea.vmem %s2497_s7, 256  ;;  %p2499_p0 = scmp.lt.s32.totalorder %s4526_s17, %s2497_s7 }
  0x1e   : > { %p2494_p12 = pnand %p2493_p11, %p2634_p5  ;;  %p2500_p1 = scmp.lt.s32.totalorder %s2498_s8, %s2492_s6 }
  0x1f   : > { %245 = vperm.xlu1 %2427, %v227_v5   ;;  %240 = vperm.xlu0 %2426, %v226_v6  }
  0x20   : > { %p2495_p13 = pneg %p2494_p12  ;;  %p2501_p2 = por %p2500_p1, %p2499_p0 }
  0x22   : > { %p2502_p3 = pnand %p2501_p2, %p2495_p13 }
  0x23   : > { %306 = vperm.xlu1 %2427, %v288_v7   ;;  %301 = vperm.xlu0 %2426, %v287_v8  }
  0x27   : > { %1977 = vperm.xlu0 %2426, %v1974_v9  }
  0x96   : > { %v231_v17 = vpop.permute.xlu0 %230  ;;  %v292_v18 = vpop.permute.xlu1 %291 }
  0x97   : > { %v269_v20 = vmul.f32 %v252_v15, %v231_v17  ;;  %v271_v21 = vmul.f32 %v260_v16, %v231_v17  ;;  %v270_v33 = vmul.f32 %v2685_v26, %v231_v17  ;;  %v272_v34 = vmul.f32 %v2687_v30, %v231_v17 }
  0x99   : > { %v2680_v22 = vadd.f32 %v292_v18, %v269_v20  ;;  %v2682_v23 = vadd.f32 %v292_v18, %v271_v21  ;;  %v2695_v35 = vadd.f32 %v292_v18, %v270_v33  ;;  %v2697_v36 = vadd.f32 %v292_v18, %v272_v34 }
  0x9a   : > { %v236_v25 = vpop.permute.xlu0 %235  ;;  %v297_v29 = vpop.permute.xlu1 %296 }
  0x9b   : > { %4635 = vst [vmem:[#allocation6_spill] sm:$0xff] %v2682_v23  ;;  %v273_v27 = vmul.f32 %v252_v15, %v236_v25  ;;  %v275_v28 = vmul.f32 %v260_v16, %v236_v25  ;;  %v328_v38 = vand.u32 2139095040, %v2680_v22  ;;  %v431_v39 = vand.u32 2139095040, %v2695_v35 }
  0x9c   : > { %v534_v40 = vand.u32 2139095040, %v2682_v23  ;;  %v274_v42 = vmul.f32 %v2685_v26, %v236_v25  ;;  %v276_v43 = vmul.f32 %v2687_v30, %v236_v25  ;;  %v637_v45 = vand.u32 2139095040, %v2697_v36 }
  0x9d   : > { %v2689_v31 = vadd.f32 %v297_v29, %v273_v27  ;;  %v2691_v32 = vadd.f32 %v297_v29, %v275_v28  ;;  %v329_v47 = vshrl.u32 %v328_v38, 23  ;;  %v432_v48 = vshrl.u32 %v431_v39, 23 }
  0x9e   : > { %v2699_v37 = vpop.permute.xlu0 %240  ;;  %v246_v41 = vpop.permute.xlu1 %245  ;;  %v535_v49 = vshrl.u32 %v534_v40, 23  ;;  %v2709_v51 = vadd.f32 %v297_v29, %v274_v42  ;;  %v2711_v52 = vadd.f32 %v297_v29, %v276_v43  ;;  %v638_v54 = vshrl.u32 %v637_v45, 23 }
  0x9f   : > { %4636 = vst [vmem:[#allocation7_spill] sm:$0xff] %v2691_v32  ;;  %v277_v44 = vmul.f32 %v252_v15, %v2699_v37  ;;  %v279_v46 = vmul.f32 %v260_v16, %v2699_v37  ;;  %v281_v50 = vmul.f32 %v252_v15, %v246_v41  ;;  %v283_v55 = vmul.f32 %v260_v16, %v246_v41 }
  0xa0   : > { %v2226_v57 = vadd.s32 4294967169, %v329_v47  ;;  %v2230_v58 = vadd.s32 4294967169, %v432_v48  ;;  %v2234_v59 = vadd.s32 4294967169, %v535_v49  ;;  %v740_v60 = vand.u32 2139095040, %v2689_v31 }
  0xa1   : > { %v843_v61 = vand.u32 2139095040, %v2709_v51  ;;  %v946_v62 = vand.u32 2139095040, %v2691_v32  ;;  %v1049_v0 = vand.u32 2139095040, %v2711_v52  ;;  %v2238_v3 = vadd.s32 4294967169, %v638_v54 }
  0xa2   : > { %v307_v53 = vpop.permute.xlu1 %306  ;;  %v2713_v56 = vpop.permute.xlu0 %301  ;;  %v335_v4 = vadd.s32 1, %v2226_v57  ;;  %v438_v5 = vadd.s32 1, %v2230_v58  ;;  %v541_v6 = vadd.s32 1, %v2234_v59  ;;  %v282_v7 = vmul.f32 %v2685_v26, %v246_v41 }
  0xa3   : > { %v2718_v63 = vadd.f32 %v307_v53, %v281_v50  ;;  %v2721_v1 = vadd.f32 %v307_v53, %v283_v55  ;;  %v2724_v2 = vadd.f32 %v2713_v56, %v277_v44  ;;  %v741_v8 = vshrl.u32 %v740_v60, 23 }
  0xa4   : > { %v844_v9 = vshrl.u32 %v843_v61, 23  ;;  %v947_v10 = vshrl.u32 %v946_v62, 23  ;;  %v2728_v12 = vadd.f32 %v2713_v56, %v279_v46  ;;  %v1050_v13 = vshrl.u32 %v1049_v0, 23 }
  0xa5   : > { %4637 = vst [vmem:[#allocation8_spill] sm:$0xff] %v2718_v63  ;;  %4638 = vst [vmem:[#allocation9_spill] sm:$0xff] %v2721_v1  ;;  %v2730_v14 = vadd.f32 %v307_v53, %v282_v7  ;;  %v644_v15 = vadd.s32 1, %v2238_v3  ;;  %vm336_vm0 = vcmp.gt.s32.totalorder %v335_v4, 0  ;;  %vm439_vm1 = vcmp.gt.s32.totalorder %v438_v5, 0 }
  0xa6   : > { %4639 = vst [vmem:[#allocation10_spill] sm:$0xff] %v2724_v2  ;;  %4640 = vst [vmem:[#allocation11_spill] sm:$0xff] %v2728_v12  ;;  %vm542_vm2 = vcmp.gt.s32.totalorder %v541_v6, 0  ;;  %v2242_v16 = vadd.s32 4294967169, %v741_v8  ;;  %v2246_v17 = vadd.s32 4294967169, %v844_v9  ;;  %v2250_v18 = vadd.s32 4294967169, %v947_v10 }
  0xa7   : > { %4641 = vst [vmem:[#allocation12_spill] sm:$0xff] %v2730_v14  ;;  %v1564_v19 = vand.u32 2139095040, %v2718_v63  ;;  %v2254_v20 = vadd.s32 4294967169, %v1050_v13  ;;  %v1667_v21 = vand.u32 2139095040, %v2730_v14  ;;  %vm645_vm3 = vcmp.gt.s32.totalorder %v644_v15, 0 }
  0xa8   : > { %v1770_v24 = vand.u32 2139095040, %v2721_v1  ;;  %v337_v25 = vsel %vm336_vm0, %v335_v4, 0  ;;  %v440_v27 = vsel %vm439_vm1, %v438_v5, 0  ;;  %v543_v28 = vsel %vm542_vm2, %v541_v6, 0 }
  0xa9   : > { %v284_v29 = vmul.f32 %v2687_v30, %v246_v41  ;;  %v747_v33 = vadd.s32 1, %v2242_v16  ;;  %v850_v34 = vadd.s32 1, %v2246_v17  ;;  %v953_v38 = vadd.s32 1, %v2250_v18 }
  0xaa   : > { %v1565_v39 = vshrl.u32 %v1564_v19, 23  ;;  %v646_v40 = vsel %vm645_vm3, %v644_v15, 0  ;;  %v1056_v42 = vadd.s32 1, %v2254_v20  ;;  %v1668_v44 = vshrl.u32 %v1667_v21, 23 }
  0xab   : > { %v2736_v43 = vadd.f32 %v307_v53, %v284_v29  ;;  %v2738_v45 = vshrl.u32 %v337_v25, 5  ;;  %v2740_v46 = vand.u32 31, %v337_v25  ;;  %v2742_v47 = vshrl.u32 %v440_v27, 5 }
  0xac   : > { %v1771_v48 = vshrl.u32 %v1770_v24, 23  ;;  %v2744_v49 = vand.u32 31, %v440_v27  ;;  %v2746_v50 = vshrl.u32 %v543_v28, 5  ;;  %v2748_v41 = vand.u32 31, %v543_v28 }
  0xad   : > { %4642 = vst [vmem:[#allocation13_spill] sm:$0xff] %v2736_v43  ;;  %v278_v54 = vmul.f32 %v2685_v26, %v2699_v37  ;;  %vm748_vm4 = vcmp.gt.s32.totalorder %v747_v33, 0  ;;  %vm851_vm5 = vcmp.gt.s32.totalorder %v850_v34, 0  ;;  %vm954_vm6 = vcmp.gt.s32.totalorder %v953_v38, 0 }
  0xae   : > { %4643 = vst [vmem:[#allocation14_spill] sm:$0xff] %v2746_v50  ;;  %4644 = vst [vmem:[#allocation15_spill] sm:$0xff] %v2748_v41  ;;  %v2274_v53 = vadd.s32 4294967169, %v1565_v39  ;;  %vm1057_vm7 = vcmp.gt.s32.totalorder %v1056_v42, 0  ;;  %v2278_v55 = vadd.s32 4294967169, %v1668_v44  ;;  %v1873_v57 = vand.u32 2139095040, %v2736_v43 }
  0xaf   : > { %v2754_v58 = vadd.f32 %v2713_v56, %v278_v54  ;;  %v2756_v59 = vshrl.u32 %v646_v40, 5  ;;  %v2758_v60 = vand.u32 31, %v646_v40  ;;  %v2282_v61 = vadd.s32 4294967169, %v1771_v48 }
  0xb0   : > { %v1152_v62 = vand.u32 2139095040, %v2724_v2  ;;  %v2762_v26 = vsub.s32 32, %v2740_v46  ;;  %v2765_v0 = vsub.s32 32, %v2744_v49  ;;  %v749_v3 = vsel %vm748_vm4, %v747_v33, 0 }
  0xb1   : > { %4645 = vst [vmem:[#allocation16_spill] sm:$0xff] %v2754_v58  ;;  %v280_v4 = vmul.f32 %v2687_v30, %v2699_v37  ;;  %v852_v5 = vsel %vm851_vm5, %v850_v34, 0  ;;  %v955_v6 = vsel %vm954_vm6, %v953_v38, 0  ;;  %v1058_v7 = vsel %vm1057_vm7, %v1056_v42, 0 }
  0xb2   : > { %v1571_v8 = vadd.s32 1, %v2274_v53  ;;  %v1674_v9 = vadd.s32 1, %v2278_v55  ;;  %v1874_v10 = vshrl.u32 %v1873_v57, 23  ;;  %v1255_v15 = vand.u32 2139095040, %v2754_v58 }
  0xb3   : > { %v2770_v13 = vadd.f32 %v2713_v56, %v280_v4  ;;  %v2773_v16 = vand.u32 31, %v749_v3  ;;  %v1777_v17 = vadd.s32 1, %v2282_v61  ;;  %v1153_v18 = vshrl.u32 %v1152_v62, 23 }
  0xb4   : > { %v1358_v19 = vand.u32 2139095040, %v2728_v12  ;;  %v2777_v20 = vsub.s32 32, %v2748_v41  ;;  %v2780_v30 = vsub.s32 32, %v2758_v60  ;;  %v2782_v37 = vshrl.u32 %v749_v3, 5 }
  0xb5   : > { %4646 = vst [vmem:[#allocation17_spill] sm:$0xff] %v2770_v13  ;;  %v2784_v21 = vand.u32 31, %v852_v5  ;;  %v2786_v56 = vshrl.u32 %v852_v5, 5  ;;  %v2788_v24 = vand.u32 31, %v955_v6  ;;  %v2790_v25 = vand.u32 31, %v1058_v7 }
  0xb6   : > { %4647 = vst [vmem:[#allocation18_spill] sm:$0xff] %v2777_v20  ;;  %vm1572_vm8 = vcmp.gt.s32.totalorder %v1571_v8, 0  ;;  %vm1675_vm9 = vcmp.gt.s32.totalorder %v1674_v9, 0  ;;  %v2286_v27 = vadd.s32 4294967169, %v1874_v10  ;;  %v1256_v28 = vshrl.u32 %v1255_v15, 23 }
  0xb7   : > { %4648 = vst [vmem:[#allocation19_spill] sm:$0xff] %v2788_v24  ;;  %v1461_v29 = vand.u32 2139095040, %v2770_v13  ;;  %v2794_v33 = vsub.s32 32, %v2773_v16  ;;  %vm1778_vm10 = vcmp.gt.s32.totalorder %v1777_v17, 0  ;;  %v2258_v34 = vadd.s32 4294967169, %v1153_v18 }
  0xb8   : > { %v1359_v38 = vshrl.u32 %v1358_v19, 23  ;;  %v2797_v39 = vsub.s32 32, %v2784_v21  ;;  %v2799_v40 = vshrl.u32 %v955_v6, 5  ;;  %v2801_v42 = vshrl.u32 %v1058_v7, 5 }
  0xb9   : > { %v1573_v44 = vsel %vm1572_vm8, %v1571_v8, 0  ;;  %v2804_v48 = vsub.s32 32, %v2788_v24  ;;  %v2807_v54 = vsub.s32 32, %v2790_v25  ;;  %v1676_v53 = vsel %vm1675_vm9, %v1674_v9, 0 }
  0xba   : > { %4649 = vst [vmem:[#allocation20_spill] sm:$0xff] %v2799_v40  ;;  %v4572_v55 = vand.u32 2147483647, %v2695_v35  ;;  %v1779_v57 = vsel %vm1778_vm10, %v1777_v17, 0  ;;  %v2810_v61 = vadd.s32 1, %v2286_v27  ;;  %v2812_v62 = vadd.s32 4294967169, %v1256_v28 }
  0xbb   : > { %4650 = vst [vmem:[#allocation21_spill] sm:$0xff] %v2804_v48  ;;  %v2814_v3 = vshrl.u32 %v1461_v29, 23  ;;  %v2816_v4 = vshrl.u32 %v1573_v44, 5  ;;  %v2818_v5 = vand.u32 31, %v1573_v44  ;;  %v2820_v6 = vadd.s32 1, %v2258_v34 }
  0xbc   : > { %v2822_v7 = vadd.s32 4294967169, %v1359_v38  ;;  %v2824_v8 = vshrl.u32 %v1676_v53, 5  ;;  %v435_v9 = vand.u32 8388607, %v4572_v55  ;;  %v4573_v10 = vmov 683565275  }
  0xbd   : > { %4651 = vst [vmem:[#allocation22_spill] sm:$0xff] %v2814_v3  ;;  %4652 = vst [vmem:[#allocation23_spill] sm:$0xff] %v2816_v4  ;;  %v445_v15 = vshll.u32 %v4573_v10, %v2744_v49  ;;  %v4579_v17 = vmov 2475754826   ;;  %v2832_v19 = vand.u32 31, %v1676_v53  ;;  %v2834_v27 = vshrl.u32 %v1779_v57, 5 }
  0xbe   : > { %4653 = vst [vmem:[#allocation24_spill] sm:$0xff] %v2818_v5  ;;  %4654 = vst [vmem:[#allocation25_spill] sm:$0xff] %v2822_v7  ;;  %v446_v18 = vshrl.u32 %v4579_v17, %v2765_v0  ;;  %v448_v28 = vshll.u32 %v4579_v17, %v2744_v49  ;;  %v4585_v29 = vmov 2131351028   ;;  %v2840_v38 = vand.u32 31, %v1779_v57 }
  0xbf   : > { %4655 = vst [vmem:[#allocation26_spill] sm:$0xff] %v2834_v27  ;;  %v449_v34 = vshrl.u32 %v4585_v29, %v2765_v0  ;;  %v451_v55 = vshll.u32 %v4585_v29, %v2744_v49  ;;  %v4588_v10 = vmov 2102212464   ;;  %v444_v1 = vshrl.u32 %v4657_v11, %v2765_v0 }
  0xc0   : > { %4656 = vst [vmem:[#allocation27_spill] sm:$0xff] %v2840_v38  ;;  %v447_v44 = vor.u32 %v446_v18, %v445_v15  ;;  %v452_v53 = vshrl.u32 %v4588_v10, %v2765_v0  ;;  %v454_v17 = vshll.u32 %v4588_v10, %v2744_v49  ;;  %v4594_v12 = vmov 920167782  }
  0xc1   : > { %v450_v27 = vor.u32 %v449_v34, %v448_v28  ;;  %v455_v57 = vshrl.u32 %v4594_v12, %v2765_v0  ;;  %v436_v63 = vor.u32 8388608, %v435_v9  ;;  %v457_v18 = vshll.u32 %v4594_v12, %v2744_v49 }
  0xc2   : > { %v453_v15 = vor.u32 %v452_v53, %v451_v55  ;;  %v4592_v29 = vmov 1326507024   ;;  %vm460_vm11 = vcmp.lt.s32.totalorder %v2742_v47, 1  ;;  %vm462_vm12 = vcmp.lt.s32.totalorder %v2742_v47, 3 }
  0xc3   : > { %v458_v4 = vshrl.u32 %v4592_v29, %v2765_v0  ;;  %v456_v7 = vor.u32 %v455_v57, %v454_v17  ;;  %vm463_vm13 = vcmp.lt.s32.totalorder %v2742_v47, 4  ;;  %v464_v34 = vsel %vm460_vm11, %v444_v1, %v447_v44 }
  0xc4   : > { %v465_v10 = vsel %vm463_vm13, %v453_v15, 2102212464  ;;  %v468_v2 = vsel %vm460_vm11, %v447_v44, %v450_v27  ;;  %v2860_v55 = vsub.s32 32, %v2818_v5  ;;  %v472_v53 = vsel %vm460_vm11, %v450_v27, %v453_v15 }
  0xc5   : > { %v459_v28 = vor.u32 %v458_v4, %v457_v18  ;;  %v466_v49 = vsel %vm462_vm12, %v450_v27, %v465_v10  ;;  %v469_v9 = vsel %vm463_vm13, %v456_v7, 920167782  ;;  %vm461_vm14 = vcmp.lt.s32.totalorder %v2742_v47, 2 }
  0xc6   : > { %4658 = vst [vmem:[#allocation28_spill] sm:$0xff] %v2860_v55  ;;  %v470_v0 = vsel %vm462_vm12, %v453_v15, %v469_v9  ;;  %v476_v57 = vshll.u32 %v436_v63, 8  ;;  %v467_v29 = vsel %vm461_vm14, %v464_v34, %v466_v49  ;;  %v4598_v44 = vand.u32 2147483647, %v2709_v51 }
  0xc7   : > { %v473_v17 = vsel %vm463_vm13, %v459_v28, 1326507024  ;;  %v471_v4 = vsel %vm461_vm14, %v468_v2, %v470_v0  ;;  %v4659_v18 = vmov 2102212464   ;;  %v2879_v15 = vsub.s32 32, %v2832_v19 }
  0xc8   : > { %v474_v1 = vsel %vm462_vm12, %v456_v7, %v473_v17  ;;  %v2872_v12 = vshll.u32 %v4659_v18, %v2818_v5  ;;  %v2874_v27 = vmul.u32.u64.low %v476_v57, %v471_v4  ;;  %v2875_v43 = vmul.u32.u64.high %v476_v57, %v471_v4, %v2874_v27 }
  0xc9   : > { %v475_v10 = vsel %vm461_vm14, %v472_v53, %v474_v1  ;;  %v847_v2 = vand.u32 8388607, %v4598_v44  ;;  %v1690_v47 = vshll.u32 %v4659_v18, %v2832_v19  ;;  %v483_v7 = vmul.u32 %v476_v57, %v467_v29 }
  0xca   : > { %v2881_v63 = vmul.u32.u64.low %v476_v57, %v475_v10  ;;  %v2882_v28 = vmul.u32.u64.high %v476_v57, %v475_v10, %v2881_v63  ;;  %v857_v34 = vshll.u32 %v4657_v11, %v2784_v21  ;;  %v4660_v49 = vmov 2475754826  }
  0xcb   : > { %v858_v9 = vshrl.u32 %v4660_v49, %v2797_v39  ;;  %v860_v53 = vshll.u32 %v4660_v49, %v2784_v21  ;;  %v4661_v0 = vmov 2131351028   ;;  %v864_v1 = vshrl.u32 %v4659_v18, %v2797_v39 }
  0xcc   : > { %v861_v17 = vshrl.u32 %v4661_v0, %v2797_v39  ;;  %v863_v4 = vshll.u32 %v4661_v0, %v2784_v21  ;;  %v486_v29 = vadd.s32 1, %v2875_v43  ;;  %v866_v10 = vshll.u32 %v4659_v18, %v2784_v21 }
  0xcd   : > { %v859_v57 = vor.u32 %v858_v9, %v857_v34  ;;  %v4662_v63 = vmov 920167782   ;;  %vm485_vm15 = vc.u32 %v2882_v28, %v2874_v27  ;;  %v848_v13 = vor.u32 8388608, %v847_v2 }
  0xce   : > { %v867_v44 = vshrl.u32 %v4662_v63, %v2797_v39  ;;  %v862_v14 = vor.u32 %v861_v17, %v860_v53  ;;  %v865_v58 = vor.u32 %v864_v1, %v863_v4  ;;  %v487_v40 = vsel %vm485_vm15, %v486_v29, %v2875_v43 }
  0xcf   : > { %v869_v48 = vshll.u32 %v4662_v63, %v2784_v21  ;;  %v4663_v34 = vmov 1326507024   ;;  %v1691_v32 = vshrl.u32 %v4662_v63, %v2879_v15  ;;  %v488_v50 = vadd.s32 %v487_v40, %v483_v7 }
  0xd0   : > { %v868_v24 = vor.u32 %v867_v44, %v866_v10  ;;  %v870_v9 = vshrl.u32 %v4663_v34, %v2797_v39  ;;  %v856_v41 = vshrl.u32 %v4657_v11, %v2797_v39  ;;  %vm872_vm0 = vcmp.lt.s32.totalorder %v2786_v56, 1 }
  0xd1   : > { %vm874_vm1 = vcmp.lt.s32.totalorder %v2786_v56, 3  ;;  %vm875_vm2 = vcmp.lt.s32.totalorder %v2786_v56, 4  ;;  %v880_v43 = vsel %vm872_vm0, %v859_v57, %v862_v14  ;;  %v489_v44 = vadd.s32 536870912, %v488_v50 }
  0xd2   : > { %v871_v2 = vor.u32 %v870_v9, %v869_v48  ;;  %v877_v21 = vsel %vm875_vm2, %v865_v58, 2102212464  ;;  %v881_v53 = vsel %vm875_vm2, %v868_v24, 920167782  ;;  %v884_v17 = vsel %vm872_vm0, %v862_v14, %v865_v58 }
  0xd3   : > { %vm873_vm3 = vcmp.lt.s32.totalorder %v2786_v56, 2  ;;  %v882_v4 = vsel %vm874_vm1, %v865_v58, %v881_v53  ;;  %v888_v40 = vshll.u32 %v848_v13, 8  ;;  %v490_v7 = vshrl.u32 %v489_v44, 30 }
  0xd4   : > { %v885_v1 = vsel %vm875_vm2, %v871_v2, 1326507024  ;;  %v876_v29 = vsel %vm872_vm0, %v856_v41, %v859_v57  ;;  %v883_v39 = vsel %vm873_vm3, %v880_v43, %v882_v4  ;;  %v878_v10 = vsel %vm874_vm1, %v862_v14, %v877_v21 }
  0xd5   : > { %v886_v48 = vsel %vm874_vm1, %v868_v24, %v885_v1  ;;  %v2924_v20 = vmul.u32.u64.low %v888_v40, %v883_v39  ;;  %v2925_v23 = vmul.u32.u64.high %v888_v40, %v883_v39, %v2924_v20  ;;  %v1588_v3 = vshrl.u32 %v4662_v63, %v2860_v55 }
  0xd6   : > { %v887_v9 = vsel %vm873_vm3, %v884_v17, %v886_v48  ;;  %v491_v58 = vshll.u32 %v490_v7, 30  ;;  %v2935_v41 = vshll.u32 %v4662_v63, %v2818_v5  ;;  %v2937_v24 = vor.u32 %v1691_v32, %v1690_v47 }
  0xd7   : > { %v2930_v2 = vmul.u32.u64.low %v888_v40, %v887_v9  ;;  %v2931_v13 = vmul.u32.u64.high %v888_v40, %v887_v9, %v2930_v2  ;;  %v2941_v14 = vshll.u32 %v4662_v63, %v2832_v19  ;;  %v2945_v57 = vshrl.u32 %v4663_v34, %v2879_v15 }
  0xd8   : > { %4664 = vst [vmem:[#allocation29_spill] sm:$0xff] %v2935_v41  ;;  %v2949_v43 = vshrl.u32 %v4663_v34, %v2860_v55  ;;  %vm1699_vm4 = vcmp.lt.s32.totalorder %v2824_v8, 4  ;;  %v2952_v44 = vsub.s32 %v488_v50, %v491_v58  ;;  %v879_v32 = vsel %vm873_vm3, %v876_v29, %v878_v10 }
  0xd9   : > { %v2957_v47 = vsub.s32 32, %v2840_v38  ;;  %v2961_v21 = vshll.u32 %v4659_v18, %v2840_v38  ;;  %vm1881_vm5 = vcmp.gt.s32.totalorder %v2810_v61, 0  ;;  %v898_v53 = vadd.s32 1, %v2925_v23 }
  0xda   : > { %4665 = vst [vmem:[#allocation30_spill] sm:$0xff] %v2949_v43  ;;  %v2966_v17 = vor.u32 %v1588_v3, %v2872_v12  ;;  %v494_v50 = vsub.s32 0, %v2952_v44  ;;  %vm897_vm6 = vc.u32 %v2931_v13, %v2924_v20  ;;  %v4617_v56 = vand.u32 2147483647, %v2697_v36 }
  0xdb   : > { %4666 = vst [vmem:[#allocation31_spill] sm:$0xff] %v2957_v47  ;;  %4667 = vst [vmem:[#allocation32_spill] sm:$0xff] %v2961_v21  ;;  %v2977_v1 = vsel %vm1699_vm4, %v2937_v24, 920167782  ;;  %v895_v29 = vmul.u32 %v888_v40, %v879_v32  ;;  %v899_v39 = vsel %vm897_vm6, %v898_v53, %v2925_v23  ;;  %v2981_v12 = vsel %vm1881_vm5, %v2810_v61, 0 }
  0xdc   : > { %4668 = vst [vmem:[#allocation33_spill] sm:$0xff] %v2966_v17  ;;  %vm430_vm7 = vcmp.lt.s32.totalorder %v2695_v35, 0  ;;  %v2231_v3 = vmin.u32 %v494_v50, %v2952_v44  ;;  %v652_v48 = vshrl.u32 %v4660_v49, %v2780_v30  ;;  %v514_v10 = vsub.s32 4, %v490_v7 }
  0xdd   : > { %v900_v9 = vadd.s32 %v899_v39, %v895_v29  ;;  %v651_v58 = vshll.u32 %v4657_v11, %v2758_v60  ;;  %v655_v40 = vshrl.u32 %v4661_v0, %v2780_v30  ;;  %v641_v23 = vand.u32 8388607, %v4617_v56 }
  0xde   : > { %v496_v2 = vclz %v2231_v3  ;;  %v658_v61 = vshrl.u32 %v4659_v18, %v2780_v30  ;;  %v661_v32 = vshrl.u32 %v4662_v63, %v2780_v30  ;;  %v654_v50 = vshll.u32 %v4660_v49, %v2758_v60 }
  0xdf   : > { %v901_v53 = vadd.s32 536870912, %v900_v9  ;;  %v660_v29 = vshll.u32 %v4659_v18, %v2758_v60  ;;  %v664_v39 = vshrl.u32 %v4663_v34, %v2780_v30  ;;  %v4669_v3 = vand.u32 2147483647, %v2695_v35 }
  0xe0   : > { %v484_v4 = vadd.s32 %v2874_v27, %v2882_v28  ;;  %v2232_v21 = vadd.s32 4294967294, %v496_v2  ;;  %v653_v47 = vor.u32 %v652_v48, %v651_v58  ;;  %v657_v38 = vshll.u32 %v4661_v0, %v2758_v60 }
  0xe1   : > { %vm3005_vm8 = vcmp.le.f32.partialorder %v4669_v3, 0.7853982  ;;  %v902_v5 = vshrl.u32 %v901_v53, 30  ;;  %v656_v55 = vor.u32 %v655_v40, %v654_v50  ;;  %v662_v17 = vor.u32 %v661_v32, %v660_v29 }
  0xe2   : > { %v663_v43 = vshll.u32 %v4662_v63, %v2758_v60  ;;  %vm1160_vm9 = vcmp.gt.s32.totalorder %v2820_v6, 0  ;;  %vm2233_vm10 = vcmp.lt.s32.totalorder %v2232_v21, 0  ;;  %v515_v3 = vsel %vm430_vm7, %v514_v10, %v490_v7 }
  0xe3   : > { %v650_v27 = vshrl.u32 %v4657_v11, %v2780_v30  ;;  %v659_v28 = vor.u32 %v658_v61, %v657_v38  ;;  %v499_v48 = vsel %vm2233_vm10, 0, %v2232_v21  ;;  %v903_v58 = vshll.u32 %v902_v5, 30 }
  0xe4   : > { %v642_v2 = vor.u32 8388608, %v641_v23  ;;  %v665_v41 = vor.u32 %v664_v39, %v663_v43  ;;  %v500_v53 = vsub.s32 32, %v499_v48  ;;  %v504_v40 = vsub.s32 4294967266, %v499_v48 }
  0xe5   : > { %vm666_vm11 = vcmp.lt.s32.totalorder %v2756_v59, 1  ;;  %vm669_vm12 = vcmp.lt.s32.totalorder %v2756_v59, 4  ;;  %v3022_v60 = vsub.s32 %v900_v9, %v903_v58  ;;  %vm668_vm13 = vcmp.lt.s32.totalorder %v2756_v59, 3 }
  0xe6   : > { %v674_v7 = vsel %vm666_vm11, %v653_v47, %v656_v55  ;;  %v675_v10 = vsel %vm669_vm12, %v662_v17, 920167782  ;;  %v501_v30 = vshll.u32 %v2952_v44, %v499_v48  ;;  %v502_v38 = vshrl.u32 %v484_v4, %v500_v53 }
  0xe7   : > { %v505_v21 = vadd.s32 127, %v504_v40  ;;  %v676_v43 = vsel %vm668_vm13, %v659_v28, %v675_v10  ;;  %v906_v23 = vsub.s32 0, %v3022_v60  ;;  %v671_v61 = vsel %vm669_vm12, %v659_v28, 2102212464 }
  0xe8   : > { %v678_v9 = vsel %vm666_vm11, %v656_v55, %v659_v28  ;;  %v679_v32 = vsel %vm669_vm12, %v665_v41, 1326507024  ;;  %v503_v50 = vor.u32 %v502_v38, %v501_v30  ;;  %vm667_vm14 = vcmp.lt.s32.totalorder %v2756_v59, 2 }
  0xe9   : > { %v506_v29 = vshll.u32 %v505_v21, 23  ;;  %v680_v39 = vsel %vm668_vm13, %v662_v17, %v679_v32  ;;  %v517_v44 = vsel %vm3005_vm8, 0, %v515_v3  ;;  %v2247_v4 = vmin.u32 %v906_v23, %v3022_v60 }
  0xea   : > { %v677_v48 = vsel %vm667_vm14, %v674_v7, %v676_v43  ;;  %v682_v58 = vshll.u32 %v642_v2, 8  ;;  %v670_v41 = vsel %vm666_vm11, %v650_v27, %v653_v47  ;;  %v672_v28 = vsel %vm668_vm13, %v656_v55, %v671_v61 }
  0xeb   : > { %v507_v53 = vor.u32 4788187, %v506_v29  ;;  %v681_v40 = vsel %vm667_vm14, %v678_v9, %v680_v39  ;;  %v908_v17 = vclz %v2247_v4  ;;  %v926_v10 = vsub.s32 4, %v902_v5 }
  0xec   : > { %v3047_v30 = vmul.u32.u64.low %v682_v58, %v681_v40  ;;  %v3048_v3 = vmul.u32.u64.high %v682_v58, %v681_v40, %v3047_v30  ;;  %v510_v21 = vcvt.s32.f32 %v503_v50  ;;  %v4672_v47 = vor.u32 %v2945_v57, %v2941_v14 }
  0xed   : > { %v508_v38 = vand.u32 2147483647, %v507_v53  ;;  %v3050_v23 = vmul.u32.u64.low %v682_v58, %v677_v48  ;;  %v3051_v7 = vmul.u32.u64.high %v682_v58, %v677_v48, %v3050_v23  ;;  %v3064_v27 = vsel %vm1160_vm9, %v2820_v6, 0 }
  0xee   : > { %v3059_v55 = vsel %vm1699_vm4, %v4672_v47, 1326507024  ;;  %v2248_v2 = vadd.s32 4294967294, %v908_v17  ;;  %v673_v43 = vsel %vm667_vm14, %v670_v41, %v672_v28  ;;  %v3069_v61 = vand.u32 31, %v2981_v12 }
  0xef   : > { %v511_v9 = vmul.f32 %v510_v21, %v508_v38  ;;  %v3071_v32 = vand.u32 3, %v517_v44  ;;  %vm842_vm15 = vcmp.lt.s32.totalorder %v2709_v51, 0  ;;  %v896_v14 = vadd.s32 %v2924_v20, %v2931_v13 }
  0xf0   : > { %4673 = vst [vmem:[#allocation34_spill] sm:$0xff] %v3069_v61  ;;  %vm2249_vm0 = vcmp.lt.s32.totalorder %v2248_v2, 0  ;;  %v927_v6 = vsel %vm842_vm15, %v926_v10, %v902_v5  ;;  %vm691_vm1 = vc.u32 %v3048_v3, %v3050_v23  ;;  %v689_v50 = vmul.u32 %v682_v58, %v673_v43 }
  0xf1   : > { %v512_v59 = vxor.u32 2147483648, %v511_v9  ;;  %v911_v57 = vsel %vm2249_vm0, 0, %v2248_v2  ;;  %v692_v29 = vadd.s32 1, %v3051_v7  ;;  %v1046_v4 = vand.u32 2147483647, %v2711_v52 }
  0xf2   : > { %v912_v39 = vsub.s32 32, %v911_v57  ;;  %v916_v44 = vsub.s32 4294967266, %v911_v57  ;;  %v1063_v48 = vshll.u32 %v4657_v11, %v2790_v25  ;;  %v4674_v5 = vand.u32 2147483647, %v2709_v51 }
  0xf3   : > { %v513_v20 = vsel %vm430_vm7, %v512_v59, %v511_v9  ;;  %v913_v58 = vshll.u32 %v3022_v60, %v911_v57  ;;  %v693_v53 = vsel %vm691_vm1, %v692_v29, %v3051_v7  ;;  %v1064_v41 = vshrl.u32 %v4660_v49, %v2807_v54 }
  0xf4   : > { %vm3088_vm2 = vcmp.le.f32.partialorder %v4674_v5, 0.7853982  ;;  %v516_v28 = vsel %vm3005_vm8, %v2695_v35, %v513_v20  ;;  %v914_v40 = vshrl.u32 %v896_v14, %v912_v39  ;;  %v917_v17 = vadd.s32 127, %v916_v44 }
  0xf5   : > { %v694_v10 = vadd.s32 %v693_v53, %v689_v50  ;;  %2428 = vcosq.f32 %v516_v28  ;;  %v1066_v30 = vshll.u32 %v4660_v49, %v2790_v25  ;;  %v1067_v38 = vshrl.u32 %v4661_v0, %v2807_v54 }
  0xf6   : > { %v1070_v60 = vshrl.u32 %v4659_v18, %v2807_v54  ;;  %2430 = vsinq.f32 %v516_v28  ;;  %v915_v21 = vor.u32 %v914_v40, %v913_v58  ;;  %v918_v7 = vshll.u32 %v917_v17, 23 }
  0xf7   : > { %v695_v47 = vadd.s32 536870912, %v694_v10  ;;  %v1069_v56 = vshll.u32 %v4661_v0, %v2790_v25  ;;  %v1072_v2 = vshll.u32 %v4659_v18, %v2790_v25  ;;  %v1073_v43 = vshrl.u32 %v4662_v63, %v2807_v54 }
  0xf8   : > { %v1076_v9 = vshrl.u32 %v4663_v34, %v2807_v54  ;;  %v919_v14 = vor.u32 4788187, %v918_v7  ;;  %v1053_v57 = vand.u32 8388607, %v1046_v4  ;;  %v1065_v50 = vor.u32 %v1064_v41, %v1063_v48 }
  0xf9   : > { %v3113_v59 = vshrl.u32 %v695_v47, 30  ;;  %v1068_v29 = vor.u32 %v1067_v38, %v1066_v30  ;;  %v1071_v39 = vor.u32 %v1070_v60, %v1069_v56  ;;  %v1074_v44 = vor.u32 %v1073_v43, %v1072_v2 }
  0xfa   : > { %v1075_v20 = vshll.u32 %v4662_v63, %v2790_v25  ;;  %v920_v5 = vand.u32 2147483647, %v919_v14  ;;  %v922_v58 = vcvt.s32.f32 %v915_v21  ;;  %vm1081_vm3 = vcmp.lt.s32.totalorder %v2801_v42, 4 }
  0xfb   : > { %v697_v53 = vshll.u32 %v3113_v59, 30  ;;  %vm523_vm5 = vcmp.eq.s32.totalorder %v3071_v32, 0  ;;  %vm526_vm6 = vcmp.eq.s32.totalorder %v3071_v32, 2  ;;  %v1087_v48 = vsel %vm1081_vm3, %v1074_v44, 920167782 }
  0xfc   : > { %v1077_v28 = vor.u32 %v1076_v9, %v1075_v20  ;;  %v923_v41 = vmul.f32 %v922_v58, %v920_v5  ;;  %v929_v40 = vsel %vm3088_vm2, 0, %v927_v6  ;;  %v1062_v25 = vshrl.u32 %v4657_v11, %v2807_v54 }
  0xfd   : > { %v3127_v17 = vsub.s32 %v694_v10, %v697_v53  ;;  %v1054_v30 = vor.u32 8388608, %v1053_v57  ;;  %vm1078_vm7 = vcmp.lt.s32.totalorder %v2801_v42, 1  ;;  %vm1080_vm8 = vcmp.lt.s32.totalorder %v2801_v42, 3 }
  0xfe   : > { %v1083_v38 = vsel %vm1081_vm3, %v1071_v39, 2102212464  ;;  %v924_v60 = vxor.u32 2147483648, %v923_v41  ;;  %v1086_v7 = vsel %vm1078_vm7, %v1065_v50, %v1068_v29  ;;  %v1088_v6 = vsel %vm1080_vm8, %v1071_v39, %v1087_v48 }
  0xff   : > { %v700_v21 = vsub.s32 0, %v3127_v17  ;;  %v2429_v10 = vpop.eup %2428  ;;  %v3140_v47 = vand.u32 3, %v929_v40  ;;  %vm1079_vm9 = vcmp.lt.s32.totalorder %v2801_v42, 2  ;;  %v1082_v54 = vsel %vm1078_vm7, %v1062_v25, %v1065_v50 }
 0x100   : > { %v1091_v56 = vsel %vm1081_vm3, %v1077_v28, 1326507024  ;;  %v2431_v2 = vpop.eup %2430  ;;  %v527_v43 = vxor.u32 2147483648, %v2429_v10  ;;  %v925_v9 = vsel %vm842_vm15, %v924_v60, %v923_v41  ;;  %v1090_v57 = vsel %vm1078_vm7, %v1068_v29, %v1071_v39 }
 0x101   : > { %v2239_v14 = vmin.u32 %v700_v21, %v3127_v17  ;;  %v524_v20 = vxor.u32 2147483648, %v2431_v2  ;;  %v928_v5 = vsel %vm3088_vm2, %v2709_v51, %v925_v9  ;;  %v1084_v50 = vsel %vm1080_vm8, %v1068_v29, %v1083_v38 }
 0x102   : > { %v1089_v58 = vsel %vm1079_vm9, %v1086_v7, %v1088_v6  ;;  %2432 = vcosq.f32 %v928_v5  ;;  %v1092_v28 = vsel %vm1080_vm8, %v1074_v44, %v1091_v56  ;;  %v1094_v48 = vshll.u32 %v1054_v30, 8 }
 0x103   : > { %v702_v53 = vclz %v2239_v14  ;;  %v525_v39 = vsel %vm523_vm5, %v2429_v10, %v524_v20  ;;  %v528_v41 = vsel %vm526_vm6, %v527_v43, %v2431_v2  ;;  %2434 = vsinq.f32 %v928_v5 }
 0x104   : > { %v1093_v13 = vsel %vm1079_vm9, %v1090_v57, %v1092_v28  ;;  %v3168_v29 = vadd.s32 1, %v2812_v62  ;;  %vm522_vm10 = vcmp.lt.s32.totalorder %v3071_v32, 2  ;;  %v1085_v44 = vsel %vm1079_vm9, %v1082_v54, %v1084_v50 }
 0x105   : > { %v2240_v40 = vadd.s32 4294967294, %v702_v53  ;;  %v3170_v25 = vmul.u32.u64.low %v1094_v48, %v1093_v13  ;;  %v3171_v38 = vmul.u32.u64.high %v1094_v48, %v1093_v13, %v3170_v25  ;;  %vm520_vm11 = vweird.f32 %v2695_v35 }
 0x106   : > { %v3176_v30 = vmul.u32.u64.low %v1094_v48, %v1089_v58  ;;  %v3177_v60 = vmul.u32.u64.high %v1094_v48, %v1089_v58, %v3176_v30  ;;  %v529_v21 = vsel %vm522_vm10, %v525_v39, %v528_v41  ;;  %v325_v62 = vand.u32 2147483647, %v2680_v22 }
 0x107   : > { %vm2241_vm12 = vcmp.lt.s32.totalorder %v2240_v40, 0  ;;  %vm935_vm13 = vcmp.eq.s32.totalorder %v3140_v47, 0  ;;  %vm938_vm14 = vcmp.eq.s32.totalorder %v3140_v47, 2  ;;  %v690_v32 = vadd.s32 %v3050_v23, %v3048_v3 }
 0x108   : > { %v705_v7 = vsel %vm2241_vm12, 0, %v2240_v40  ;;  %vm934_vm15 = vcmp.lt.s32.totalorder %v3140_v47, 2  ;;  %v720_v10 = vsub.s32 4, %v3113_v59  ;;  %v1101_v54 = vmul.u32 %v1094_v48, %v1085_v44 }
 0x109   : > { %v706_v42 = vsub.s32 32, %v705_v7  ;;  %v710_v6 = vsub.s32 4294967266, %v705_v7  ;;  %v530_v35 = vsel %vm520_vm11, nan, %v529_v21  ;;  %vm932_vm0 = vweird.f32 %v2709_v51 }
 0x10a   : > { %vm1103_vm1 = vc.u32 %v3171_v38, %v3176_v30  ;;  %v1104_v56 = vadd.s32 1, %v3177_v60  ;;  %v343_v2 = vshrl.u32 %v4660_v49, %v2762_v26  ;;  %v707_v3 = vshll.u32 %v3127_v17, %v705_v7 }
 0x10b   : > { %v708_v23 = vshrl.u32 %v690_v32, %v706_v42  ;;  %v711_v43 = vadd.s32 127, %v710_v6  ;;  %v332_v9 = vand.u32 8388607, %v325_v62  ;;  %v342_v57 = vshll.u32 %v4657_v11, %v2740_v46 }
 0x10c   : > { %v1105_v14 = vsel %vm1103_vm1, %v1104_v56, %v3177_v60  ;;  %v346_v20 = vshrl.u32 %v4661_v0, %v2762_v26  ;;  %v352_v5 = vshrl.u32 %v4662_v63, %v2762_v26  ;;  %v2433_v50 = vpop.eup %2432  ;;  %vm636_vm2 = vcmp.lt.s32.totalorder %v2697_v36, 0 }
 0x10d   : > { %v709_v17 = vor.u32 %v708_v23, %v707_v3  ;;  %v712_v58 = vshll.u32 %v711_v43, 23  ;;  %v1106_v53 = vadd.s32 %v1105_v14, %v1101_v54  ;;  %v345_v28 = vshll.u32 %v4660_v49, %v2740_v46  ;;  %v2435_v48 = vpop.eup %2434 }
 0x10e   : > { %v939_v39 = vxor.u32 2147483648, %v2433_v50  ;;  %v344_v41 = vor.u32 %v343_v2, %v342_v57  ;;  %v349_v13 = vshrl.u32 %v4659_v18, %v2762_v26  ;;  %v351_v40 = vshll.u32 %v4659_v18, %v2740_v46 }
 0x10f   : > { %v936_v25 = vxor.u32 2147483648, %v2435_v48  ;;  %v4677_v44 = vand.u32 2147483647, %v2697_v36  ;;  %v713_v21 = vor.u32 4788187, %v712_v58  ;;  %v1107_v32 = vadd.s32 536870912, %v1106_v53 }
 0x110   : > { %v348_v7 = vshll.u32 %v4661_v0, %v2740_v46  ;;  %v940_v42 = vsel %vm938_vm14, %v939_v39, %v2435_v48  ;;  %v347_v6 = vor.u32 %v346_v20, %v345_v28  ;;  %v353_v54 = vor.u32 %v352_v5, %v351_v40 }
 0x111   : > { %vm3213_vm3 = vcmp.le.f32.partialorder %v4677_v44, 0.7853982  ;;  %v355_v56 = vshrl.u32 %v4663_v34, %v2762_v26  ;;  %v937_v2 = vsel %vm935_vm13, %v2433_v50, %v936_v25  ;;  %v714_v3 = vand.u32 2147483647, %v713_v21 }
 0x112   : > { %v716_v23 = vcvt.s32.f32 %v709_v17  ;;  %v1108_v43 = vshrl.u32 %v1107_v32, 30  ;;  %v941_v14 = vsel %vm934_vm15, %v937_v2, %v940_v42  ;;  %v333_v57 = vor.u32 8388608, %v332_v9 }
 0x113   : > { %v350_v58 = vor.u32 %v349_v13, %v348_v7  ;;  %v354_v44 = vshll.u32 %v4662_v63, %v2740_v46  ;;  %v942_v20 = vsel %vm932_vm0, nan, %v941_v14  ;;  %vm1048_vm5 = vcmp.lt.s32.totalorder %v2711_v52, 0 }
 0x114   : > { %v717_v5 = vmul.f32 %v716_v23, %v714_v3  ;;  %v1109_v28 = vshll.u32 %v1108_v43, 30  ;;  %vm360_vm6 = vcmp.lt.s32.totalorder %v2738_v45, 4  ;;  %v2298_v50 = vpack.c.bf16 %v942_v20, %v530_v35 }
 0x115   : > { %v356_v17 = vor.u32 %v355_v56, %v354_v44  ;;  %vm357_vm7 = vcmp.lt.s32.totalorder %v2738_v45, 1  ;;  %v366_v47 = vsel %vm360_vm6, %v353_v54, 920167782  ;;  %vm359_vm8 = vcmp.lt.s32.totalorder %v2738_v45, 3 }
 0x116   : > { %v718_v9 = vxor.u32 2147483648, %v717_v5  ;;  %v3236_v48 = vsub.s32 %v1106_v53, %v1109_v28  ;;  %v365_v51 = vsel %vm357_vm7, %v344_v41, %v347_v6  ;;  %2299 = vmatprep.subr.bf16.mxu0 %v2298_v50  ;;  %v721_v46 = vsel %vm636_vm2, %v720_v10, %v3113_v59 }
 0x117   : > { %v341_v35 = vshrl.u32 %v4657_v11, %v2762_v26  ;;  %vm358_vm9 = vcmp.lt.s32.totalorder %v2738_v45, 2  ;;  %v367_v39 = vsel %vm359_vm8, %v350_v58, %v366_v47  ;;  %v1132_v40 = vsub.s32 4, %v1108_v43 }
 0x118   : > { %v719_v53 = vsel %vm636_vm2, %v718_v9, %v717_v5  ;;  %v1112_v13 = vsub.s32 0, %v3236_v48  ;;  %v362_v25 = vsel %vm360_vm6, %v350_v58, 2102212464  ;;  %v368_v26 = vsel %vm358_vm9, %v365_v51, %v367_v39 }
 0x119   : > { %v722_v59 = vsel %vm3213_vm3, %v2697_v36, %v719_v53  ;;  %v369_v10 = vsel %vm357_vm7, %v347_v6, %v350_v58  ;;  %v370_v21 = vsel %vm360_vm6, %v356_v17, 1326507024  ;;  %v723_v32 = vsel %vm3213_vm3, 0, %v721_v46 }
 0x11a   : > { %2436 = vcosq.f32 %v722_v59  ;;  %v2255_v7 = vmin.u32 %v1112_v13, %v3236_v48  ;;  %v373_v42 = vshll.u32 %v333_v57, 8  ;;  %v361_v56 = vsel %vm357_vm7, %v341_v35, %v344_v41 }
 0x11b   : > { %2438 = vsinq.f32 %v722_v59  ;;  %v363_v2 = vsel %vm359_vm8, %v347_v6, %v362_v25  ;;  %v371_v3 = vsel %vm359_vm8, %v353_v54, %v370_v21  ;;  %vm1263_vm10 = vcmp.gt.s32.totalorder %v3168_v29, 0 }
 0x11c   : > { %v1114_v23 = vclz %v2255_v7  ;;  %v372_v14 = vsel %vm358_vm9, %v369_v10, %v371_v3  ;;  %v3274_v60 = vmul.u32.u64.low %v373_v42, %v368_v26  ;;  %v3275_v58 = vmul.u32.u64.high %v373_v42, %v368_v26, %v3274_v60 }
 0x11d   : > { %v1133_v57 = vsel %vm1048_vm5, %v1132_v40, %v1108_v43  ;;  %v3281_v41 = vmul.u32.u64.low %v373_v42, %v372_v14  ;;  %v3282_v44 = vmul.u32.u64.high %v373_v42, %v372_v14, %v3281_v41  ;;  %v3285_v6 = vshrl.u32 %v2981_v12, 5 }
 0x11e   : > { %v3287_v54 = vand.u32 3, %v723_v32  ;;  %v2256_v20 = vadd.s32 4294967294, %v1114_v23  ;;  %v364_v5 = vsel %vm358_vm9, %v361_v56, %v363_v2  ;;  %v3292_v28 = vsub.s32 32, %v3069_v61 }
 0x11f   : > { %v3296_v50 = vshll.u32 %v4659_v18, %v3069_v61  ;;  %v3299_v43 = vand.u32 31, %v3064_v27  ;;  %vm3303_vm11 = vcmp.le.f32.partialorder %v1046_v4, 0.7853982  ;;  %v3308_v17 = vsel %vm1263_vm10, %v3168_v29, 0 }
 0x120   : > { %4680 = vst [vmem:[#allocation35_spill] sm:$0xff] %v3292_v28  ;;  %vm2257_vm12 = vcmp.lt.s32.totalorder %v2256_v20, 0  ;;  %v1135_v45 = vsel %vm3303_vm11, 0, %v1133_v57  ;;  %v383_v47 = vadd.s32 1, %v3275_v58  ;;  %v380_v51 = vmul.u32 %v373_v42, %v364_v5 }
 0x121   : > { %v1117_v9 = vsel %vm2257_vm12, 0, %v2256_v20  ;;  %vm382_vm13 = vc.u32 %v3282_v44, %v3274_v60  ;;  %v737_v46 = vand.u32 2147483647, %v2689_v31  ;;  %vm732_vm14 = vcmp.eq.s32.totalorder %v3287_v54, 2 }
 0x122   : > { %v1102_v4 = vadd.s32 %v3176_v30, %v3171_v38  ;;  %v1118_v29 = vsub.s32 32, %v1117_v9  ;;  %v1122_v35 = vsub.s32 4294967266, %v1117_v9  ;;  %v384_v39 = vsel %vm382_vm13, %v383_v47, %v3275_v58 }
 0x123   : > { %vm729_vm15 = vcmp.eq.s32.totalorder %v3287_v54, 0  ;;  %v3321_v53 = vand.u32 3, %v1135_v45  ;;  %v385_v13 = vadd.s32 %v384_v39, %v380_v51  ;;  %v754_v40 = vshll.u32 %v4657_v11, %v2773_v16 }
 0x124   : > { %v755_v25 = vshrl.u32 %v4660_v49, %v2794_v33  ;;  %v2437_v59 = vpop.eup %2436  ;;  %v1119_v26 = vshll.u32 %v3236_v48, %v1117_v9  ;;  %v1120_v10 = vshrl.u32 %v1102_v4, %v1118_v29  ;;  %v1123_v38 = vadd.s32 127, %v1122_v35 }
 0x125   : > { %v764_v30 = vshrl.u32 %v4662_v63, %v2794_v33  ;;  %v2439_v21 = vpop.eup %2438  ;;  %v386_v32 = vadd.s32 536870912, %v385_v13  ;;  %v744_v7 = vand.u32 8388607, %v737_v46  ;;  %v758_v42 = vshrl.u32 %v4661_v0, %v2794_v33 }
 0x126   : > { %v761_v56 = vshrl.u32 %v4659_v18, %v2794_v33  ;;  %vm728_vm0 = vcmp.lt.s32.totalorder %v3287_v54, 2  ;;  %v1121_v2 = vor.u32 %v1120_v10, %v1119_v26  ;;  %v1124_v48 = vshll.u32 %v1123_v38, 23 }
 0x127   : > { %v763_v3 = vshll.u32 %v4659_v18, %v2773_v16  ;;  %v767_v23 = vshrl.u32 %v4663_v34, %v2794_v33  ;;  %v733_v14 = vxor.u32 2147483648, %v2437_v59  ;;  %v387_v58 = vshrl.u32 %v386_v32, 30 }
 0x128   : > { %v757_v57 = vshll.u32 %v4660_v49, %v2773_v16  ;;  %v760_v41 = vshll.u32 %v4661_v0, %v2773_v16  ;;  %v730_v20 = vxor.u32 2147483648, %v2439_v21  ;;  %v1125_v5 = vor.u32 4788187, %v1124_v48 }
 0x129   : > { %v765_v45 = vor.u32 %v764_v30, %v763_v3  ;;  %v766_v47 = vshll.u32 %v4662_v63, %v2773_v16  ;;  %v388_v9 = vshll.u32 %v387_v58, 30  ;;  %v756_v51 = vor.u32 %v755_v25, %v754_v40 }
 0x12a   : > { %v759_v4 = vor.u32 %v758_v42, %v757_v57  ;;  %v762_v29 = vor.u32 %v761_v56, %v760_v41  ;;  %v1126_v35 = vand.u32 2147483647, %v1125_v5  ;;  %v1128_v39 = vcvt.s32.f32 %v1121_v2 }
 0x12b   : > { %v745_v26 = vor.u32 8388608, %v744_v7  ;;  %v768_v10 = vor.u32 %v767_v23, %v766_v47  ;;  %v734_v38 = vsel %vm732_vm14, %v733_v14, %v2439_v21  ;;  %v3349_v32 = vsub.s32 %v385_v13, %v388_v9 }
 0x12c   : > { %vm769_vm1 = vcmp.lt.s32.totalorder %v2782_v37, 1  ;;  %vm772_vm2 = vcmp.lt.s32.totalorder %v2782_v37, 4  ;;  %v731_v16 = vsel %vm729_vm15, %v2437_v59, %v730_v20  ;;  %v1129_v30 = vmul.f32 %v1128_v39, %v1126_v35 }
 0x12d   : > { %vm771_vm3 = vcmp.lt.s32.totalorder %v2782_v37, 3  ;;  %v778_v40 = vsel %vm772_vm2, %v765_v45, 920167782  ;;  %v391_v25 = vsub.s32 0, %v3349_v32  ;;  %v753_v21 = vshrl.u32 %v4657_v11, %v2794_v33 }
 0x12e   : > { %v777_v13 = vsel %vm769_vm1, %v756_v51, %v759_v4  ;;  %v779_v7 = vsel %vm771_vm3, %v762_v29, %v778_v40  ;;  %v1130_v42 = vxor.u32 2147483648, %v1129_v30  ;;  %vm770_vm6 = vcmp.lt.s32.totalorder %v2782_v37, 2 }
 0x12f   : > { %v781_v59 = vsel %vm769_vm1, %v759_v4, %v762_v29  ;;  %v782_v56 = vsel %vm772_vm2, %v768_v10, 1326507024  ;;  %v735_v2 = vsel %vm728_vm0, %v731_v16, %v734_v38  ;;  %v2227_v33 = vmin.u32 %v391_v25, %v3349_v32 }
 0x130   : > { %v411_v48 = vsub.s32 4, %v387_v58  ;;  %v774_v3 = vsel %vm772_vm2, %v762_v29, 2102212464  ;;  %v1131_v23 = vsel %vm1048_vm5, %v1130_v42, %v1129_v30  ;;  %v780_v14 = vsel %vm770_vm6, %v777_v13, %v779_v7  ;;  %v4687_v7 = vld [vmem:[#allocation18_spill] sm:$0xff] }
 0x131   : > { %v783_v57 = vsel %vm771_vm3, %v765_v45, %v782_v56  ;;  %v785_v41 = vshll.u32 %v745_v26, 8  ;;  %v1134_v54 = vsel %vm3303_vm11, %v2711_v52, %v1131_v23  ;;  %v393_v20 = vclz %v2227_v33 }
 0x132   : > { %v773_v5 = vsel %vm769_vm1, %v753_v21, %v756_v51  ;;  %v784_v47 = vsel %vm770_vm6, %v781_v59, %v783_v57  ;;  %2440 = vcosq.f32 %v1134_v54  ;;  %v775_v9 = vsel %vm771_vm3, %v759_v4, %v774_v3  ;;  %v4683_v51 = vld [vmem:[#allocation22_spill] sm:$0xff]  ;;  %v4688_v3 = vld [vmem:[#allocation15_spill] sm:$0xff] }
 0x133   : > { %v3390_v29 = vmul.u32.u64.low %v785_v41, %v784_v47  ;;  %v3391_v35 = vmul.u32.u64.high %v785_v41, %v784_v47, %v3390_v29  ;;  %2442 = vsinq.f32 %v1134_v54  ;;  %v2228_v45 = vadd.s32 4294967294, %v393_v20  ;;  %v4686_v21 = vld [vmem:[#allocation6_spill] sm:$0xff] }
 0x134   : > { %v3393_v39 = vmul.u32.u64.low %v785_v41, %v780_v14  ;;  %v3394_v26 = vmul.u32.u64.high %v785_v41, %v780_v14, %v3393_v39  ;;  %v3398_v12 = vand.u32 31, %v3308_v17  ;;  %v3401_v10 = vadd.s32 4294967169, %v4683_v51 }
 0x135   : > { %vm726_vm5 = vweird.f32 %v2697_v36  ;;  %vm327_vm7 = vcmp.lt.s32.totalorder %v2680_v22, 0  ;;  %vm3407_vm8 = vcmp.le.f32.partialorder %v325_v62, 0.7853982  ;;  %vm2229_vm9 = vcmp.lt.s32.totalorder %v2228_v45, 0 }
 0x136   : > { %v3413_v38 = vsel %vm327_vm7, %v411_v48, %v387_v58  ;;  %v776_v16 = vsel %vm770_vm6, %v773_v5, %v775_v9  ;;  %v3417_v30 = vsel %vm726_vm5, nan, %v735_v2  ;;  %vm1144_vm10 = vcmp.eq.s32.totalorder %v3321_v53, 2 }
 0x137   : > { %v381_v36 = vadd.s32 %v3274_v60, %v3282_v44  ;;  %v396_v40 = vsel %vm2229_vm9, 0, %v2228_v45  ;;  %vm794_vm11 = vc.u32 %v3391_v35, %v3393_v39  ;;  %vm1141_vm12 = vcmp.eq.s32.totalorder %v3321_v53, 0 }
 0x138   : > { %v397_v62 = vsub.s32 32, %v396_v40  ;;  %v401_v25 = vsub.s32 4294967266, %v396_v40  ;;  %v795_v58 = vadd.s32 1, %v3394_v26  ;;  %v4627_v37 = vand.u32 2147483647, %v4686_v21 }
 0x139   : > { %vm1140_vm13 = vcmp.lt.s32.totalorder %v3321_v53, 2  ;;  %v398_v13 = vshll.u32 %v3349_v32, %v396_v40  ;;  %v414_v60 = vsel %vm3407_vm8, 0, %v3413_v38  ;;  %v792_v44 = vmul.u32 %v785_v41, %v776_v16 }
 0x13a   : > { %v549_v42 = vshrl.u32 %v4660_v49, %v4687_v7  ;;  %vm1138_vm14 = vweird.f32 %v2711_v52  ;;  %v399_v59 = vshrl.u32 %v381_v36, %v397_v62  ;;  %v402_v56 = vadd.s32 127, %v401_v25 }
 0x13b   : > { %v796_v2 = vsel %vm794_vm11, %v795_v58, %v3394_v26  ;;  %v552_v33 = vshrl.u32 %v4661_v0, %v4687_v7  ;;  %v548_v32 = vshll.u32 %v4657_v11, %v4688_v3  ;;  %v555_v23 = vshrl.u32 %v4659_v18, %v4687_v7 }
 0x13c   : > { %v797_v48 = vadd.s32 %v796_v2, %v792_v44  ;;  %v558_v14 = vshrl.u32 %v4662_v63, %v4687_v7  ;;  %v400_v57 = vor.u32 %v399_v59, %v398_v13  ;;  %v403_v41 = vshll.u32 %v402_v56, 23  ;;  %v2441_v5 = vpop.eup %2440 }
 0x13d   : > { %v538_v54 = vand.u32 8388607, %v4627_v37  ;;  %v551_v20 = vshll.u32 %v4660_v49, %v4688_v3  ;;  %v550_v9 = vor.u32 %v549_v42, %v548_v32  ;;  %v554_v29 = vshll.u32 %v4661_v0, %v4688_v3  ;;  %v2443_v26 = vpop.eup %2442 }
 0x13e   : > { %v798_v47 = vadd.s32 536870912, %v797_v48  ;;  %v557_v45 = vshll.u32 %v4659_v18, %v4688_v3  ;;  %v1145_v51 = vxor.u32 2147483648, %v2441_v5  ;;  %v404_v16 = vor.u32 4788187, %v403_v41  ;;  %v4689_v41 = vld [vmem:[#allocation14_spill] sm:$0xff] }
 0x13f   : > { %v553_v36 = vor.u32 %v552_v33, %v551_v20  ;;  %v561_v40 = vshrl.u32 %v4663_v34, %v4687_v7  ;;  %v1142_v62 = vxor.u32 2147483648, %v2443_v26  ;;  %v556_v58 = vor.u32 %v555_v23, %v554_v29 }
 0x140   : > { %v799_v25 = vshrl.u32 %v798_v47, 30  ;;  %v559_v13 = vor.u32 %v558_v14, %v557_v45  ;;  %v1146_v44 = vsel %vm1144_vm10, %v1145_v51, %v2443_v26  ;;  %v405_v42 = vand.u32 2147483647, %v404_v16 }
 0x141   : > { %v407_v59 = vcvt.s32.f32 %v400_v57  ;;  %vm739_vm15 = vcmp.lt.s32.totalorder %v2689_v31, 0  ;;  %v560_v56 = vshll.u32 %v4662_v63, %v4688_v3  ;;  %v1143_v2 = vsel %vm1141_vm12, %v2441_v5, %v1142_v62 }
 0x142   : > { %v800_v33 = vshll.u32 %v799_v25, 30  ;;  %v539_v32 = vor.u32 8388608, %v538_v54  ;;  %vm563_vm0 = vcmp.lt.s32.totalorder %v4689_v41, 1  ;;  %v1147_v23 = vsel %vm1140_vm13, %v1143_v2, %v1146_v44 }
 0x143   : > { %v408_v14 = vmul.f32 %v407_v59, %v405_v42  ;;  %v562_v20 = vor.u32 %v561_v40, %v560_v56  ;;  %vm566_vm1 = vcmp.lt.s32.totalorder %v4689_v41, 4  ;;  %v1148_v57 = vsel %vm1138_vm14, nan, %v1147_v23 }
 0x144   : > { %v3467_v47 = vsub.s32 %v797_v48, %v800_v33  ;;  %vm565_vm2 = vcmp.lt.s32.totalorder %v4689_v41, 3  ;;  %v572_v3 = vsel %vm566_vm1, %v559_v13, 920167782  ;;  %v2306_v54 = vpack.c.bf16 %v1148_v57, %v3417_v30 }
 0x145   : > { %v409_v5 = vxor.u32 2147483648, %v408_v14  ;;  %v571_v53 = vsel %vm563_vm0, %v550_v9, %v553_v36  ;;  %v573_v29 = vsel %vm565_vm2, %v556_v58, %v572_v3  ;;  %v823_v52 = vsub.s32 4, %v799_v25 }
 0x146   : > { %v803_v45 = vsub.s32 0, %v3467_v47  ;;  %v547_v48 = vshrl.u32 %v4657_v11, %v4687_v7  ;;  %v568_v26 = vsel %vm566_vm1, %v556_v58, 2102212464  ;;  %2307 = vmatprep.subr.bf16.mxu1 %v2306_v54  ;;  %vm564_vm3 = vcmp.lt.s32.totalorder %v4689_v41, 2 }
 0x147   : > { %v410_v30 = vsel %vm327_vm7, %v409_v5, %v408_v14  ;;  %v575_v51 = vsel %vm563_vm0, %v553_v36, %v556_v58  ;;  %v576_v16 = vsel %vm566_vm1, %v562_v20, 1326507024  ;;  %v574_v44 = vsel %vm564_vm3, %v571_v53, %v573_v29  ;;  %v4692_v5 = vld [vmem:[#allocation7_spill] sm:$0xff] }
 0x148   : > { %v413_v40 = vsel %vm3407_vm8, %v2680_v22, %v410_v30  ;;  %v2243_v7 = vmin.u32 %v803_v45, %v3467_v47  ;;  %v567_v62 = vsel %vm563_vm0, %v547_v48, %v550_v9  ;;  %v569_v42 = vsel %vm565_vm2, %v553_v36, %v568_v26 }
 0x149   : > { %2444 = vcosq.f32 %v413_v40  ;;  %v577_v58 = vsel %vm565_vm2, %v559_v13, %v576_v16  ;;  %v579_v59 = vshll.u32 %v539_v32, 8  ;;  %v824_v2 = vsel %vm739_vm15, %v823_v52, %v799_v25 }
 0x14a   : > { %2446 = vsinq.f32 %v413_v40  ;;  %v805_v56 = vclz %v2243_v7  ;;  %v578_v33 = vsel %vm564_vm3, %v575_v51, %v577_v58  ;;  %v3514_v36 = vshrl.u32 %v4662_v63, %v3292_v28  ;;  %v4694_v58 = vld [vmem:[#allocation19_spill] sm:$0xff] }
 0x14b   : > { %v3505_v9 = vmul.u32.u64.low %v579_v59, %v578_v33  ;;  %v3506_v23 = vmul.u32.u64.high %v579_v59, %v578_v33, %v3505_v9  ;;  %v3508_v14 = vmul.u32.u64.low %v579_v59, %v574_v44  ;;  %v3509_v20 = vmul.u32.u64.high %v579_v59, %v574_v44, %v3508_v14 }
 0x14c   : > { %v3518_v13 = vshll.u32 %v4662_v63, %v3069_v61  ;;  %v3522_v25 = vshrl.u32 %v4663_v34, %v3292_v28  ;;  %v2244_v32 = vadd.s32 4294967294, %v805_v56  ;;  %v3528_v57 = vand.u32 3, %v414_v60  ;;  %v4695_v61 = vld [vmem:[#allocation20_spill] sm:$0xff] }
 0x14d   : > { %vm3532_vm6 = vcmp.le.f32.partialorder %v737_v46, 0.7853982  ;;  %v570_v54 = vsel %vm564_vm3, %v567_v62, %v569_v42  ;;  %v4626_v53 = vand.u32 2147483647, %v4692_v5  ;;  %v3540_v29 = vshrl.u32 %v3308_v17, 5 }
 0x14e   : > { %v3543_v4 = vadd.s32 1, %v3401_v10  ;;  %vm2245_vm5 = vcmp.lt.s32.totalorder %v2244_v32, 0  ;;  %v826_v38 = vsel %vm3532_vm6, 0, %v824_v2  ;;  %v3548_v46 = vsub.s32 32, %v3398_v12 }
 0x14f   : > { %v808_v60 = vsel %vm2245_vm5, 0, %v2244_v32  ;;  %vm588_vm7 = vc.u32 %v3506_v23, %v3508_v14  ;;  %v589_v41 = vadd.s32 1, %v3509_v20  ;;  %v793_v17 = vadd.s32 %v3393_v39, %v3391_v35  ;;  %v4693_v35 = vld [vmem:[#allocation21_spill] sm:$0xff] }
 0x150   : > { %v809_v45 = vsub.s32 32, %v808_v60  ;;  %v813_v52 = vsub.s32 4294967266, %v808_v60  ;;  %v586_v10 = vmul.u32 %v579_v59, %v570_v54  ;;  %vm420_vm8 = vcmp.eq.s32.totalorder %v3528_v57, 0 }
 0x151   : > { %vm423_vm9 = vcmp.eq.s32.totalorder %v3528_v57, 2  ;;  %v810_v48 = vshll.u32 %v3467_v47, %v808_v60  ;;  %v3558_v26 = vand.u32 3, %v826_v38  ;;  %v590_v30 = vsel %vm588_vm7, %v589_v41, %v3509_v20 }
 0x152   : > { %v950_v51 = vand.u32 8388607, %v4626_v53  ;;  %v811_v16 = vshrl.u32 %v793_v17, %v809_v45  ;;  %v814_v40 = vadd.s32 127, %v813_v52  ;;  %v591_v7 = vadd.s32 %v590_v30, %v586_v10 }
 0x153   : > { %v970_v39 = vshrl.u32 %v4662_v63, %v4693_v35  ;;  %v2445_v62 = vpop.eup %2444  ;;  %v961_v44 = vshrl.u32 %v4660_v49, %v4693_v35  ;;  %v964_v47 = vshrl.u32 %v4661_v0, %v4693_v35  ;;  %v967_v42 = vshrl.u32 %v4659_v18, %v4693_v35 }
 0x154   : > { %v969_v59 = vshll.u32 %v4659_v18, %v4694_v58  ;;  %v2447_v56 = vpop.eup %2446  ;;  %vm419_vm10 = vcmp.lt.s32.totalorder %v3528_v57, 2  ;;  %v812_v2 = vor.u32 %v811_v16, %v810_v48  ;;  %v815_v33 = vshll.u32 %v814_v40, 23 }
 0x155   : > { %v592_v9 = vadd.s32 536870912, %v591_v7  ;;  %v960_v20 = vshll.u32 %v4657_v11, %v4694_v58  ;;  %v963_v32 = vshll.u32 %v4660_v49, %v4694_v58  ;;  %v966_v54 = vshll.u32 %v4661_v0, %v4694_v58 }
 0x156   : > { %v971_v38 = vor.u32 %v970_v39, %v969_v59  ;;  %v973_v60 = vshrl.u32 %v4663_v34, %v4693_v35  ;;  %v421_v41 = vxor.u32 2147483648, %v2447_v56  ;;  %v424_v17 = vxor.u32 2147483648, %v2445_v62 }
 0x157   : > { %v816_v45 = vor.u32 4788187, %v815_v33  ;;  %v593_v52 = vshrl.u32 %v592_v9, 30  ;;  %v962_v10 = vor.u32 %v961_v44, %v960_v20  ;;  %v965_v48 = vor.u32 %v964_v47, %v963_v32 }
 0x158   : > { %v968_v30 = vor.u32 %v967_v42, %v966_v54  ;;  %v972_v16 = vshll.u32 %v4662_v63, %v4694_v58  ;;  %vm1469_vm11 = vcmp.gt.s32.totalorder %v3543_v4, 0  ;;  %v819_v53 = vcvt.s32.f32 %v812_v2 }
 0x159   : > { %v817_v40 = vand.u32 2147483647, %v816_v45  ;;  %v594_v37 = vshll.u32 %v593_v52, 30  ;;  %vm978_vm12 = vcmp.lt.s32.totalorder %v4695_v61, 4  ;;  %v951_v39 = vor.u32 8388608, %v950_v51 }
 0x15a   : > { %v959_v59 = vshrl.u32 %v4657_v11, %v4693_v35  ;;  %v974_v28 = vor.u32 %v973_v60, %v972_v16  ;;  %v984_v44 = vsel %vm978_vm12, %v971_v38, 920167782  ;;  %v422_v47 = vsel %vm420_vm8, %v2445_v62, %v421_v41 }
 0x15b   : > { %v425_v42 = vsel %vm423_vm9, %v424_v17, %v2447_v56  ;;  %v820_v58 = vmul.f32 %v819_v53, %v817_v40  ;;  %v3594_v33 = vsub.s32 %v591_v7, %v594_v37  ;;  %vm975_vm13 = vcmp.lt.s32.totalorder %v4695_v61, 1 }
 0x15c   : > { %vm976_vm14 = vcmp.lt.s32.totalorder %v4695_v61, 2  ;;  %vm977_vm0 = vcmp.lt.s32.totalorder %v4695_v61, 3  ;;  %v980_v51 = vsel %vm978_vm12, %v968_v30, 2102212464  ;;  %v983_v9 = vsel %vm975_vm13, %v962_v10, %v965_v48 }
 0x15d   : > { %v821_v35 = vxor.u32 2147483648, %v820_v58  ;;  %v597_v2 = vsub.s32 0, %v3594_v33  ;;  %v985_v62 = vsel %vm977_vm0, %v968_v30, %v984_v44  ;;  %v426_v37 = vsel %vm419_vm10, %v422_v47, %v425_v42 }
 0x15e   : > { %v979_v53 = vsel %vm975_vm13, %v959_v59, %v962_v10  ;;  %v987_v7 = vsel %vm975_vm13, %v965_v48, %v968_v30  ;;  %v988_v56 = vsel %vm978_vm12, %v974_v28, 1326507024  ;;  %v617_v54 = vsub.s32 4, %v593_v52  ;;  %v4696_v30 = vld [vmem:[#allocation16_spill] sm:$0xff] }
 0x15f   : > { %v822_v20 = vsel %vm739_vm15, %v821_v35, %v820_v58  ;;  %v2235_v32 = vmin.u32 %v597_v2, %v3594_v33  ;;  %v981_v60 = vsel %vm977_vm0, %v965_v48, %v980_v51  ;;  %v986_v57 = vsel %vm976_vm14, %v983_v9, %v985_v62 }
 0x160   : > { %v825_v41 = vsel %vm3532_vm6, %v2689_v31, %v822_v20  ;;  %v989_v17 = vsel %vm977_vm0, %v971_v38, %v988_v56  ;;  %v991_v28 = vshll.u32 %v951_v39, 8  ;;  %v1252_v16 = vand.u32 2147483647, %v4696_v30 }
 0x161   : > { %2448 = vcosq.f32 %v825_v41  ;;  %v599_v45 = vclz %v2235_v32  ;;  %v990_v10 = vsel %vm976_vm14, %v987_v7, %v989_v17  ;;  %v982_v48 = vsel %vm976_vm14, %v979_v53, %v981_v60 }
 0x162   : > { %2450 = vsinq.f32 %v825_v41  ;;  %v3625_v3 = vmul.u32.u64.low %v991_v28, %v990_v10  ;;  %v3626_v40 = vmul.u32.u64.high %v991_v28, %v990_v10, %v3625_v3  ;;  %vm417_vm15 = vweird.f32 %v2680_v22 }
 0x163   : > { %v2236_v59 = vadd.s32 4294967294, %v599_v45  ;;  %v3629_v44 = vmul.u32.u64.low %v991_v28, %v986_v57  ;;  %v3630_v38 = vmul.u32.u64.high %v991_v28, %v986_v57, %v3629_v44  ;;  %v3636_v39 = vsel %vm1469_vm11, %v3543_v4, 0 }
 0x164   : > { %v3638_v47 = vsel %vm417_vm15, nan, %v426_v37  ;;  %vm533_vm1 = vcmp.lt.s32.totalorder %v4686_v21, 0  ;;  %v587_v61 = vadd.s32 %v3508_v14, %v3506_v23  ;;  %vm835_vm2 = vcmp.eq.s32.totalorder %v3558_v26, 2 }
 0x165   : > { %vm2237_vm3 = vcmp.lt.s32.totalorder %v2236_v59, 0  ;;  %v3646_v22 = vsel %vm533_vm1, %v617_v54, %v593_v52  ;;  %v998_v42 = vmul.u32 %v991_v28, %v982_v48  ;;  %v3650_v58 = vand.u32 8388607, %v1252_v16 }
 0x166   : > { %vm832_vm6 = vcmp.eq.s32.totalorder %v3558_v26, 0  ;;  %v602_v4 = vsel %vm2237_vm3, 0, %v2236_v59  ;;  %vm1000_vm5 = vc.u32 %v3626_v40, %v3629_v44  ;;  %v1268_v23 = vshrl.u32 %v4657_v11, %v3548_v46 }
 0x167   : > { %v1269_v14 = vshll.u32 %v4657_v11, %v3398_v12  ;;  %vm831_vm7 = vcmp.lt.s32.totalorder %v3558_v26, 2  ;;  %v603_v52 = vsub.s32 32, %v602_v4  ;;  %v607_v51 = vsub.s32 4294967266, %v602_v4 }
 0x168   : > { %v1001_v35 = vadd.s32 1, %v3630_v38  ;;  %v1270_v2 = vshrl.u32 %v4660_v49, %v3548_v46  ;;  %vm829_vm8 = vweird.f32 %v2689_v31  ;;  %v604_v9 = vshll.u32 %v3594_v33, %v602_v4 }
 0x169   : > { %v1272_v62 = vshll.u32 %v4660_v49, %v3398_v12  ;;  %v1273_v37 = vshrl.u32 %v4661_v0, %v3548_v46  ;;  %v1276_v53 = vshrl.u32 %v4659_v18, %v3548_v46  ;;  %v605_v7 = vshrl.u32 %v587_v61, %v603_v52 }
 0x16a   : > { %v608_v56 = vadd.s32 127, %v607_v51  ;;  %v1002_v20 = vsel %vm1000_vm5, %v1001_v35, %v3630_v38  ;;  %v1279_v32 = vshrl.u32 %v4662_v63, %v3548_v46  ;;  %v1260_v60 = vor.u32 8388608, %v3650_v58 }
 0x16b   : > { %v1003_v54 = vadd.s32 %v1002_v20, %v998_v42  ;;  %v1275_v33 = vshll.u32 %v4661_v0, %v3398_v12  ;;  %v1282_v41 = vshrl.u32 %v4663_v34, %v3548_v46  ;;  %v2449_v57 = vpop.eup %2448  ;;  %v606_v17 = vor.u32 %v605_v7, %v604_v9 }
 0x16c   : > { %v609_v28 = vshll.u32 %v608_v56, 23  ;;  %v1271_v45 = vor.u32 %v1270_v2, %v1269_v14  ;;  %v1278_v10 = vshll.u32 %v4659_v18, %v3398_v12  ;;  %v2451_v48 = vpop.eup %2450  ;;  %v836_v3 = vxor.u32 2147483648, %v2449_v57 }
 0x16d   : > { %v1004_v59 = vadd.s32 536870912, %v1003_v54  ;;  %v1277_v38 = vor.u32 %v1276_v53, %v1275_v33  ;;  %v1281_v61 = vshll.u32 %v4662_v63, %v3398_v12  ;;  %v833_v42 = vxor.u32 2147483648, %v2451_v48 }
 0x16e   : > { %v610_v58 = vor.u32 4788187, %v609_v28  ;;  %v1274_v4 = vor.u32 %v1273_v37, %v1272_v62  ;;  %v1280_v52 = vor.u32 %v1279_v32, %v1278_v10  ;;  %v837_v46 = vsel %vm835_vm2, %v836_v3, %v2451_v48 }
 0x16f   : > { %v3685_v51 = vshrl.u32 %v1004_v59, 30  ;;  %v1283_v14 = vor.u32 %v1282_v41, %v1281_v61  ;;  %vm1284_vm9 = vcmp.lt.s32.totalorder %v3540_v29, 1  ;;  %v834_v35 = vsel %vm832_vm6, %v2449_v57, %v833_v42 }
 0x170   : > { %v611_v2 = vand.u32 2147483647, %v610_v58  ;;  %v613_v9 = vcvt.s32.f32 %v606_v17  ;;  %vm1287_vm10 = vcmp.lt.s32.totalorder %v3540_v29, 4  ;;  %v838_v12 = vsel %vm831_vm7, %v834_v35, %v837_v46 }
 0x171   : > { %v1006_v62 = vshll.u32 %v3685_v51, 30  ;;  %vm1286_vm11 = vcmp.lt.s32.totalorder %v3540_v29, 3  ;;  %v1289_v37 = vsel %vm1287_vm10, %v1277_v38, 2102212464  ;;  %v839_v53 = vsel %vm829_vm8, nan, %v838_v12 }
 0x172   : > { %v614_v7 = vmul.f32 %v613_v9, %v611_v2  ;;  %v1292_v56 = vsel %vm1284_vm9, %v1271_v45, %v1274_v4  ;;  %v1293_v20 = vsel %vm1287_vm10, %v1280_v52, 920167782  ;;  %v2300_v26 = vpack.c.bf16 %v839_v53, %v3638_v47 }
 0x173   : > { %v3704_v32 = vsub.s32 %v1003_v54, %v1006_v62  ;;  %v1294_v33 = vsel %vm1286_vm11, %v1277_v38, %v1293_v20  ;;  %v1296_v41 = vsel %vm1284_vm9, %v1274_v4, %v1277_v38  ;;  %v1288_v31 = vsel %vm1284_vm9, %v1268_v23, %v1271_v45 }
 0x174   : > { %v615_v57 = vxor.u32 2147483648, %v614_v7  ;;  %v1290_v17 = vsel %vm1286_vm11, %v1274_v4, %v1289_v37  ;;  %v1297_v28 = vsel %vm1287_vm10, %v1283_v14, 1326507024  ;;  %2301 = vmatpush1.bf16.msra.mxu0 %v2300_v26  ;;  %v4697_v47 = vand.u32 2147483647, %v4686_v21 }
 0x175   : > { %v1009_v10 = vsub.s32 0, %v3704_v32  ;;  %vm1285_vm13 = vcmp.lt.s32.totalorder %v3540_v29, 2  ;;  %v1298_v23 = vsel %vm1286_vm11, %v1280_v52, %v1297_v28  ;;  %v1300_v59 = vshll.u32 %v1260_v60, 8  ;;  %v4700_v52 = vld [vmem:[#allocation12_spill] sm:$0xff] }
 0x176   : > { %vm3718_vm12 = vcmp.le.f32.partialorder %v4697_v47, 0.7853982  ;;  %v616_v45 = vsel %vm533_vm1, %v615_v57, %v614_v7  ;;  %v1295_v48 = vsel %vm1285_vm13, %v1292_v56, %v1294_v33  ;;  %v1299_v3 = vsel %vm1285_vm13, %v1296_v41, %v1298_v23 }
 0x177   : > { %v619_v38 = vsel %vm3718_vm12, %v4686_v21, %v616_v45  ;;  %v620_v61 = vsel %vm3718_vm12, 0, %v3646_v22  ;;  %v2251_v42 = vmin.u32 %v1009_v10, %v3704_v32  ;;  %v1291_v58 = vsel %vm1285_vm13, %v1288_v31, %v1290_v17 }
 0x178   : > { %2452 = vcosq.f32 %v619_v38  ;;  %v3735_v29 = vmul.u32.u64.low %v1300_v59, %v1299_v3  ;;  %v3736_v4 = vmul.u32.u64.high %v1300_v59, %v1299_v3, %v3735_v29  ;;  %v1664_v46 = vand.u32 2147483647, %v4700_v52 }
 0x179   : > { %2454 = vsinq.f32 %v619_v38  ;;  %v1011_v14 = vclz %v2251_v42  ;;  %v3739_v60 = vmul.u32.u64.low %v1300_v59, %v1295_v48  ;;  %v3740_v35 = vmul.u32.u64.high %v1300_v59, %v1295_v48, %v3739_v60 }
 0x17a   : > { %v3745_v2 = vor.u32 %v3514_v36, %v3296_v50  ;;  %v1901_v22 = vor.u32 %v3522_v25, %v3518_v13  ;;  %v3750_v9 = vshrl.u32 %v3064_v27, 5  ;;  %v3753_v12 = vsub.s32 32, %v3299_v43 }
 0x17b   : > { %v3756_v62 = vand.u32 31, %v3636_v39  ;;  %v3758_v37 = vand.u32 3, %v620_v61  ;;  %v999_v53 = vadd.s32 %v3629_v44, %v3626_v40  ;;  %v2252_v7 = vadd.s32 4294967294, %v1011_v14 }
 0x17c   : > { %v1307_v50 = vmul.u32 %v1300_v59, %v1291_v58  ;;  %vm1309_vm14 = vc.u32 %v3736_v4, %v3739_v60  ;;  %v1682_v27 = vshrl.u32 %v4660_v49, %v2879_v15  ;;  %v1685_v36 = vshrl.u32 %v4661_v0, %v2879_v15 }
 0x17d   : > { %vm945_vm0 = vcmp.lt.s32.totalorder %v4692_v5, 0  ;;  %vm2253_vm15 = vcmp.lt.s32.totalorder %v2252_v7, 0  ;;  %v1310_v56 = vadd.s32 1, %v3740_v35  ;;  %v1671_v20 = vand.u32 8388607, %v1664_v46 }
 0x17e   : > { %v1684_v40 = vshll.u32 %v4660_v49, %v2832_v19  ;;  %v1014_v44 = vsel %vm2253_vm15, 0, %v2252_v7  ;;  %v1681_v26 = vshll.u32 %v4657_v11, %v2832_v19  ;;  %v1687_v33 = vshll.u32 %v4661_v0, %v2832_v19 }
 0x17f   : > { %v1688_v41 = vshrl.u32 %v4659_v18, %v2879_v15  ;;  %v1015_v57 = vsub.s32 32, %v1014_v44  ;;  %v1019_v31 = vsub.s32 4294967266, %v1014_v44  ;;  %v1311_v17 = vsel %vm1309_vm14, %v1310_v56, %v3740_v35 }
 0x180   : > { %v1686_v28 = vor.u32 %v1685_v36, %v1684_v40  ;;  %vm626_vm1 = vcmp.eq.s32.totalorder %v3758_v37, 0  ;;  %vm629_vm2 = vcmp.eq.s32.totalorder %v3758_v37, 2  ;;  %v1312_v47 = vadd.s32 %v1311_v17, %v1307_v50 }
 0x181   : > { %v1683_v54 = vor.u32 %v1682_v27, %v1681_v26  ;;  %v1689_v10 = vor.u32 %v1688_v41, %v1687_v33  ;;  %v1016_v23 = vshll.u32 %v3704_v32, %v1014_v44  ;;  %v1017_v45 = vshrl.u32 %v999_v53, %v1015_v57 }
 0x182   : > { %v1020_v48 = vadd.s32 127, %v1019_v31  ;;  %v1029_v19 = vsub.s32 4, %v3685_v51  ;;  %v2453_v3 = vpop.eup %2452  ;;  %v1313_v59 = vadd.s32 536870912, %v1312_v47  ;;  %v1672_v38 = vor.u32 8388608, %v1671_v20 }
 0x183   : > { %vm1696_vm3 = vcmp.lt.s32.totalorder %v2824_v8, 1  ;;  %vm1697_vm6 = vcmp.lt.s32.totalorder %v2824_v8, 2  ;;  %v2455_v61 = vpop.eup %2454  ;;  %v1018_v42 = vor.u32 %v1017_v45, %v1016_v23  ;;  %vm1698_vm5 = vcmp.lt.s32.totalorder %v2824_v8, 3 }
 0x184   : > { %v1021_v58 = vshll.u32 %v1020_v48, 23  ;;  %v1708_v29 = vsel %vm1696_vm3, %v1686_v28, %v1689_v10  ;;  %v630_v32 = vxor.u32 2147483648, %v2453_v3  ;;  %v1314_v14 = vshrl.u32 %v1313_v59, 30 }
 0x185   : > { %v1704_v35 = vsel %vm1696_vm3, %v1683_v54, %v1686_v28  ;;  %v1706_v53 = vsel %vm1698_vm5, %v1689_v10, %v2977_v1  ;;  %v627_v7 = vxor.u32 2147483648, %v2455_v61  ;;  %v1701_v27 = vsel %vm1699_vm4, %v1689_v10, 2102212464 }
 0x186   : > { %v1022_v50 = vor.u32 4788187, %v1021_v58  ;;  %v1710_v36 = vsel %vm1698_vm5, %v2937_v24, %v3059_v55  ;;  %v1030_v56 = vsel %vm945_vm0, %v1029_v19, %v3685_v51  ;;  %v1315_v20 = vshll.u32 %v1314_v14, 30 }
 0x187   : > { %v1680_v40 = vshrl.u32 %v4657_v11, %v2879_v15  ;;  %v1711_v1 = vsel %vm1697_vm6, %v1708_v29, %v1710_v36  ;;  %v1025_v26 = vcvt.s32.f32 %v1018_v42  ;;  %v1707_v33 = vsel %vm1697_vm6, %v1704_v35, %v1706_v53 }
 0x188   : > { %v1023_v44 = vand.u32 2147483647, %v1022_v50  ;;  %v1712_v41 = vshll.u32 %v1672_v38, 8  ;;  %v631_v24 = vsel %vm629_vm2, %v630_v32, %v2455_v61  ;;  %v3812_v55 = vsub.s32 %v1312_v47, %v1315_v20  ;;  %v4701_v47 = vld [vmem:[#allocation17_spill] sm:$0xff] }
 0x189   : > { %v1700_v51 = vsel %vm1696_vm3, %v1680_v40, %v1683_v54  ;;  %v1702_v15 = vsel %vm1698_vm5, %v1686_v28, %v1701_v27  ;;  %v628_v57 = vsel %vm626_vm1, %v2453_v3, %v627_v7  ;;  %v1458_v19 = vand.u32 2147483647, %v4701_v47 }
 0x18a   : > { %v1026_v31 = vmul.f32 %v1025_v26, %v1023_v44  ;;  %v3820_v17 = vmul.u32.u64.low %v1712_v41, %v1711_v1  ;;  %v3821_v10 = vmul.u32.u64.high %v1712_v41, %v1711_v1, %v3820_v17  ;;  %v1318_v23 = vsub.s32 0, %v3812_v55 }
 0x18b   : > { %v3824_v45 = vmul.u32.u64.low %v1712_v41, %v1707_v33  ;;  %v3825_v48 = vmul.u32.u64.high %v1712_v41, %v1707_v33, %v3824_v45  ;;  %v3830_v54 = vshrl.u32 %v3636_v39, 5  ;;  %v1473_v28 = vsub.s32 32, %v3756_v62 }
 0x18c   : > { %v4702_v59 = vand.u32 2147483647, %v4692_v5  ;;  %v1027_v38 = vxor.u32 2147483648, %v1026_v31  ;;  %vm625_vm7 = vcmp.lt.s32.totalorder %v3758_v37, 2  ;;  %v2263_v42 = vmin.u32 %v1318_v23, %v3812_v55 }
 0x18d   : > { %v1703_v39 = vsel %vm1697_vm6, %v1700_v51, %v1702_v15  ;;  %v632_v58 = vsel %vm625_vm7, %v628_v57, %v631_v24  ;;  %v1338_v32 = vsub.s32 4, %v1314_v14  ;;  %vm1721_vm8 = vc.u32 %v3821_v10, %v3824_v45 }
 0x18e   : > { %vm3835_vm4 = vcmp.le.f32.partialorder %v4702_v59, 0.7853982  ;;  %v1028_v29 = vsel %vm945_vm0, %v1027_v38, %v1026_v31  ;;  %v1320_v35 = vclz %v2263_v42  ;;  %v1722_v53 = vadd.s32 1, %v3825_v48 }
 0x18f   : > { %v1032_v61 = vsel %vm3835_vm4, 0, %v1030_v56  ;;  %v1031_v37 = vsel %vm3835_vm4, %v4692_v5, %v1028_v29  ;;  %v3855_v7 = vand.u32 8388607, %v1458_v19  ;;  %vm623_vm9 = vweird.f32 %v4686_v21 }
 0x190   : > { %2456 = vcosq.f32 %v1031_v37  ;;  %v3858_v8 = vand.u32 3, %v1032_v61  ;;  %v1719_v50 = vmul.u32 %v1712_v41, %v1703_v39  ;;  %vm1254_vm10 = vcmp.lt.s32.totalorder %v4696_v30, 0 }
 0x191   : > { %2458 = vsinq.f32 %v1031_v37  ;;  %v2264_v27 = vadd.s32 4294967294, %v1320_v35  ;;  %v1723_v36 = vsel %vm1721_vm8, %v1722_v53, %v3825_v48  ;;  %v3862_v56 = vsel %vm623_vm9, nan, %v632_v58 }
 0x192   : > { %v1308_v20 = vadd.s32 %v3739_v60, %v3736_v4  ;;  %v3868_v40 = vsel %vm1254_vm10, %v1338_v32, %v1314_v14  ;;  %v1724_v21 = vadd.s32 %v1723_v36, %v1719_v50  ;;  %v1466_v1 = vor.u32 8388608, %v3855_v7  ;;  %v4707_v7 = vld [vmem:[#allocation13_spill] sm:$0xff] }
 0x193   : > { %vm2265_vm11 = vcmp.lt.s32.totalorder %v2264_v27, 0  ;;  %v1474_v44 = vshrl.u32 %v4657_v11, %v1473_v28  ;;  %v1482_v26 = vshrl.u32 %v4659_v18, %v1473_v28  ;;  %vm1041_vm12 = vcmp.eq.s32.totalorder %v3858_v8, 2 }
 0x194   : > { %v1323_v33 = vsel %vm2265_vm11, 0, %v2264_v27  ;;  %v1725_v41 = vadd.s32 536870912, %v1724_v21  ;;  %v1476_v24 = vshrl.u32 %v4660_v49, %v1473_v28  ;;  %v1479_v4 = vshrl.u32 %v4661_v0, %v1473_v28 }
 0x195   : > { %vm1038_vm13 = vcmp.eq.s32.totalorder %v3858_v8, 0  ;;  %v1324_v60 = vsub.s32 32, %v1323_v33  ;;  %v1328_v14 = vsub.s32 4294967266, %v1323_v33  ;;  %v1481_v51 = vshll.u32 %v4661_v0, %v3756_v62 }
 0x196   : > { %v1485_v15 = vshrl.u32 %v4662_v63, %v1473_v28  ;;  %vm1037_vm14 = vcmp.lt.s32.totalorder %v3858_v8, 2  ;;  %v3881_v57 = vshrl.u32 %v1725_v41, 30  ;;  %v1475_v31 = vshll.u32 %v4657_v11, %v3756_v62 }
 0x197   : > { %v1478_v17 = vshll.u32 %v4660_v49, %v3756_v62  ;;  %v1484_v23 = vshll.u32 %v4659_v18, %v3756_v62  ;;  %vm1035_vm0 = vweird.f32 %v4692_v5  ;;  %v1325_v48 = vshll.u32 %v3812_v55, %v1323_v33 }
 0x198   : > { %v1326_v59 = vshrl.u32 %v1308_v20, %v1324_v60  ;;  %v1329_v3 = vadd.s32 127, %v1328_v14  ;;  %v1483_v38 = vor.u32 %v1482_v26, %v1481_v51  ;;  %v1727_v61 = vshll.u32 %v3881_v57, 30 }
 0x199   : > { %v1477_v42 = vor.u32 %v1476_v24, %v1475_v31  ;;  %v1480_v39 = vor.u32 %v1479_v4, %v1478_v17  ;;  %v1488_v58 = vshrl.u32 %v4663_v34, %v1473_v28  ;;  %vm3895_vm15 = vcmp.le.f32.partialorder %v1252_v16, 0.7853982 }
 0x19a   : > { %v1327_v32 = vor.u32 %v1326_v59, %v1325_v48  ;;  %v1330_v37 = vshll.u32 %v1329_v3, 23  ;;  %v1486_v35 = vor.u32 %v1485_v15, %v1484_v23  ;;  %v1487_v55 = vshll.u32 %v4662_v63, %v3756_v62  ;;  %v2457_v53 = vpop.eup %2456 }
 0x19b   : > { %v3901_v50 = vsub.s32 %v1724_v21, %v1727_v61  ;;  %vm1490_vm1 = vcmp.lt.s32.totalorder %v3830_v54, 1  ;;  %vm1491_vm2 = vcmp.lt.s32.totalorder %v3830_v54, 2  ;;  %vm1493_vm3 = vcmp.lt.s32.totalorder %v3830_v54, 4  ;;  %v2459_v28 = vpop.eup %2458 }
 0x19c   : > { %v1042_v16 = vxor.u32 2147483648, %v2457_v53  ;;  %v1331_v27 = vor.u32 4788187, %v1330_v37  ;;  %vm1492_vm6 = vcmp.lt.s32.totalorder %v3830_v54, 3  ;;  %v1495_v36 = vsel %vm1493_vm3, %v1483_v38, 2102212464 }
 0x19d   : > { %vm1905_vm5 = vcmp.lt.s32.totalorder %v3285_v6, 4  ;;  %v1039_v62 = vxor.u32 2147483648, %v2459_v28  ;;  %v1730_v20 = vsub.s32 0, %v3901_v50  ;;  %v1489_v21 = vor.u32 %v1488_v58, %v1487_v55 }
 0x19e   : > { %v1498_v26 = vsel %vm1490_vm1, %v1477_v42, %v1480_v39  ;;  %v1043_v33 = vsel %vm1041_vm12, %v1042_v16, %v2459_v28  ;;  %v1332_v41 = vand.u32 2147483647, %v1331_v27  ;;  %v1334_v24 = vcvt.s32.f32 %v1327_v32 }
 0x19f   : > { %v1499_v4 = vsel %vm1493_vm3, %v1486_v35, 920167782  ;;  %v1040_v60 = vsel %vm1038_vm13, %v2457_v53, %v1039_v62  ;;  %v2279_v14 = vmin.u32 %v1730_v20, %v3901_v50  ;;  %v1494_v51 = vsel %vm1490_vm1, %v1474_v44, %v1477_v42 }
 0x1a0   : > { %v1496_v15 = vsel %vm1492_vm6, %v1480_v39, %v1495_v36  ;;  %v1044_v31 = vsel %vm1037_vm14, %v1040_v60, %v1043_v33  ;;  %v1335_v17 = vmul.f32 %v1334_v24, %v1332_v41  ;;  %v1500_v23 = vsel %vm1492_vm6, %v1483_v38, %v1499_v4  ;;  %v4708_v60 = vld [vmem:[#allocation35_spill] sm:$0xff] }
 0x1a1   : > { %v1502_v48 = vsel %vm1490_vm1, %v1480_v39, %v1483_v38  ;;  %v1045_v59 = vsel %vm1035_vm0, nan, %v1044_v31  ;;  %v1732_v3 = vclz %v2279_v14  ;;  %v1501_v44 = vsel %vm1491_vm2, %v1498_v26, %v1500_v23 }
 0x1a2   : > { %v1503_v61 = vsel %vm1493_vm3, %v1489_v21, 1326507024  ;;  %v2308_v8 = vpack.c.bf16 %v1045_v59, %v3862_v56  ;;  %v1336_v42 = vxor.u32 2147483648, %v1335_v17  ;;  %v1506_v32 = vshll.u32 %v1466_v1, 8  ;;  %v4713_v59 = vld [vmem:[#allocation25_spill] sm:$0xff] }
 0x1a3   : > { %v1504_v58 = vsel %vm1492_vm6, %v1486_v35, %v1503_v61  ;;  %v1341_v5 = vsel %vm3895_vm15, 0, %v3868_v40  ;;  %v2280_v38 = vadd.s32 4294967294, %v1732_v3  ;;  %v1497_v39 = vsel %vm1491_vm2, %v1494_v51, %v1496_v15 }
 0x1a4   : > { %v1505_v37 = vsel %vm1491_vm2, %v1502_v48, %v1504_v58  ;;  %2309 = vmatpush1.bf16.msra.mxu1 %v2308_v8  ;;  %v1337_v56 = vsel %vm1254_vm10, %v1336_v42, %v1335_v17  ;;  %v1870_v1 = vand.u32 2147483647, %v4707_v7  ;;  %vm1666_vm4 = vcmp.lt.s32.totalorder %v4700_v52, 0 }
 0x1a5   : > { %v3950_v55 = vmul.u32.u64.low %v1506_v32, %v1505_v37  ;;  %v3951_v35 = vmul.u32.u64.high %v1506_v32, %v1505_v37, %v3950_v55  ;;  %v1340_v40 = vsel %vm3895_vm15, %v4696_v30, %v1337_v56  ;;  %vm2281_vm7 = vcmp.lt.s32.totalorder %v2280_v38, 0 }
 0x1a6   : > { %v3958_v53 = vmul.u32.u64.low %v1506_v32, %v1501_v44  ;;  %v3959_v28 = vmul.u32.u64.high %v1506_v32, %v1501_v44, %v3958_v53  ;;  %v1911_v54 = vsel %vm1905_vm5, %v3745_v2, 920167782  ;;  %2460 = vcosq.f32 %v1340_v40 }
 0x1a7   : > { %v3965_v16 = vand.u32 3, %v1341_v5  ;;  %v1735_v27 = vsel %vm2281_vm7, 0, %v2280_v38  ;;  %2462 = vsinq.f32 %v1340_v40  ;;  %v1720_v36 = vadd.s32 %v3824_v45, %v3821_v10  ;;  %v4709_v45 = vld [vmem:[#allocation34_spill] sm:$0xff] }
 0x1a8   : > { %v1736_v62 = vsub.s32 32, %v1735_v27  ;;  %v1740_v29 = vsub.s32 4294967266, %v1735_v27  ;;  %v1750_v20 = vsub.s32 4, %v3881_v57  ;;  %v1513_v21 = vmul.u32 %v1506_v32, %v1497_v39 }
 0x1a9   : > { %vm1515_vm8 = vc.u32 %v3951_v35, %v3958_v53  ;;  %v1877_v26 = vand.u32 8388607, %v1870_v1  ;;  %v1737_v33 = vshll.u32 %v3901_v50, %v1735_v27  ;;  %v1516_v4 = vadd.s32 1, %v3959_v28 }
 0x1aa   : > { %v1738_v41 = vshrl.u32 %v1720_v36, %v1736_v62  ;;  %v1741_v24 = vadd.s32 127, %v1740_v29  ;;  %v1888_v10 = vshrl.u32 %v4660_v49, %v4708_v60  ;;  %v1890_v14 = vshll.u32 %v4660_v49, %v4709_v45 }
 0x1ab   : > { %v1891_v51 = vshrl.u32 %v4661_v0, %v4708_v60  ;;  %v1893_v15 = vshll.u32 %v4661_v0, %v4709_v45  ;;  %v1517_v50 = vsel %vm1515_vm8, %v1516_v4, %v3959_v28  ;;  %v1894_v23 = vshrl.u32 %v4659_v18, %v4708_v60 }
 0x1ac   : > { %v1739_v31 = vor.u32 %v1738_v41, %v1737_v33  ;;  %v1742_v17 = vshll.u32 %v1741_v24, 23  ;;  %v1915_v48 = vsel %vm1905_vm5, %v1901_v22, 1326507024  ;;  %vm1347_vm9 = vcmp.eq.s32.totalorder %v3965_v16, 0 }
 0x1ad   : > { %vm3995_vm10 = vcmp.le.f32.partialorder %v1664_v46, 0.7853982  ;;  %v1518_v3 = vadd.s32 %v1517_v50, %v1513_v21  ;;  %v1887_v61 = vshll.u32 %v4657_v11, %v4709_v45  ;;  %v1892_v8 = vor.u32 %v1891_v51, %v1890_v14  ;;  %v4712_v45 = vld [vmem:[#allocation10_spill] sm:$0xff] }
 0x1ae   : > { %v1743_v44 = vor.u32 4788187, %v1742_v17  ;;  %v1895_v42 = vor.u32 %v1894_v23, %v1893_v15  ;;  %vm1350_vm11 = vcmp.eq.s32.totalorder %v3965_v16, 2  ;;  %v1751_v13 = vsel %vm1666_vm4, %v1750_v20, %v3881_v57 }
 0x1af   : > { %v1519_v25 = vadd.s32 536870912, %v1518_v3  ;;  %v1878_v22 = vor.u32 8388608, %v1877_v26  ;;  %v1746_v46 = vcvt.s32.f32 %v1739_v31  ;;  %v1886_v32 = vshrl.u32 %v4657_v11, %v4708_v60 }
 0x1b0   : > { %v1744_v58 = vand.u32 2147483647, %v1743_v44  ;;  %v1889_v5 = vor.u32 %v1888_v10, %v1887_v61  ;;  %v2461_v38 = vpop.eup %2460  ;;  %vm1902_vm12 = vcmp.lt.s32.totalorder %v3285_v6, 1  ;;  %vm1904_vm13 = vcmp.lt.s32.totalorder %v3285_v6, 3 }
 0x1b1   : > { %v4007_v39 = vshrl.u32 %v1519_v25, 30  ;;  %v1907_v37 = vsel %vm1905_vm5, %v1895_v42, 2102212464  ;;  %v2463_v56 = vpop.eup %2462  ;;  %v1351_v57 = vxor.u32 2147483648, %v2461_v38  ;;  %v1914_v40 = vsel %vm1902_vm12, %v1892_v8, %v1895_v42 }
 0x1b2   : > { %v1747_v55 = vmul.f32 %v1746_v46, %v1744_v58  ;;  %v1916_v28 = vsel %vm1904_vm13, %v3745_v2, %v1915_v48  ;;  %v1348_v27 = vxor.u32 2147483648, %v2463_v56  ;;  %v1753_v36 = vsel %vm3995_vm10, 0, %v1751_v13 }
 0x1b3   : > { %v1521_v62 = vshll.u32 %v4007_v39, 30  ;;  %vm1903_vm14 = vcmp.lt.s32.totalorder %v3285_v6, 2  ;;  %v1906_v20 = vsel %vm1902_vm12, %v1886_v32, %v1889_v5  ;;  %v1910_v21 = vsel %vm1902_vm12, %v1889_v5, %v1892_v8 }
 0x1b4   : > { %v1748_v29 = vxor.u32 2147483648, %v1747_v55  ;;  %v1912_v26 = vsel %vm1904_vm13, %v1895_v42, %v1911_v54  ;;  %v1908_v41 = vsel %vm1904_vm13, %v1892_v8, %v1907_v37  ;;  %v1917_v2 = vsel %vm1903_vm14, %v1914_v40, %v1916_v28 }
 0x1b5   : > { %v4022_v33 = vsub.s32 %v1518_v3, %v1521_v62  ;;  %v1918_v24 = vshll.u32 %v1878_v22, 8  ;;  %v1349_v4 = vsel %vm1347_vm9, %v2461_v38, %v1348_v27  ;;  %v1352_v60 = vsel %vm1350_vm11, %v1351_v57, %v2463_v56 }
 0x1b6   : > { %v1749_v10 = vsel %vm1666_vm4, %v1748_v29, %v1747_v55  ;;  %v1149_v54 = vand.u32 2147483647, %v4712_v45  ;;  %vm1346_vm0 = vcmp.lt.s32.totalorder %v3965_v16, 2  ;;  %v1913_v15 = vsel %vm1903_vm14, %v1910_v21, %v1912_v26 }
 0x1b7   : > { %v1752_v14 = vsel %vm3995_vm10, %v4700_v52, %v1749_v10  ;;  %v1524_v51 = vsub.s32 0, %v4022_v33  ;;  %v4042_v31 = vand.u32 3, %v1753_v36  ;;  %v1353_v23 = vsel %vm1346_vm0, %v1349_v4, %v1352_v60 }
 0x1b8   : > { %2464 = vcosq.f32 %v1752_v14  ;;  %v4044_v17 = vmul.u32.u64.low %v1918_v24, %v1917_v2  ;;  %v4045_v50 = vmul.u32.u64.high %v1918_v24, %v1917_v2, %v4044_v17  ;;  %v1909_v16 = vsel %vm1903_vm14, %v1906_v20, %v1908_v41 }
 0x1b9   : > { %2466 = vsinq.f32 %v1752_v14  ;;  %v2271_v48 = vmin.u32 %v1524_v51, %v4022_v33  ;;  %v4051_v3 = vadd.s32 1, %v4713_v59  ;;  %v4059_v8 = vand.u32 8388607, %v1149_v54 }
 0x1ba   : > { %v4053_v44 = vmul.u32.u64.low %v1918_v24, %v1913_v15  ;;  %v4054_v61 = vmul.u32.u64.high %v1918_v24, %v1913_v15, %v4053_v44  ;;  %vm1344_vm15 = vweird.f32 %v4696_v30  ;;  %v1514_v42 = vadd.s32 %v3958_v53, %v3951_v35 }
 0x1bb   : > { %v1526_v13 = vclz %v2271_v48  ;;  %v1167_v6 = vshrl.u32 %v4660_v49, %v3753_v12  ;;  %v4066_v25 = vsel %vm1344_vm15, nan, %v1353_v23  ;;  %vm1762_vm1 = vcmp.eq.s32.totalorder %v4042_v31, 2 }
 0x1bc   : > { %v1544_v22 = vsub.s32 4, %v4007_v39  ;;  %v1925_v58 = vmul.u32 %v1918_v24, %v1909_v16  ;;  %v1165_v46 = vshrl.u32 %v4657_v11, %v3753_v12  ;;  %vm1759_vm2 = vcmp.eq.s32.totalorder %v4042_v31, 0 }
 0x1bd   : > { %v2272_v30 = vadd.s32 4294967294, %v1526_v13  ;;  %vm1927_vm3 = vc.u32 %v4045_v50, %v4053_v44  ;;  %v1166_v35 = vshll.u32 %v4657_v11, %v3299_v43  ;;  %v1170_v53 = vshrl.u32 %v4661_v0, %v3753_v12 }
 0x1be   : > { %vm1758_vm6 = vcmp.lt.s32.totalorder %v4042_v31, 2  ;;  %v1928_v32 = vadd.s32 1, %v4054_v61  ;;  %v1157_v5 = vor.u32 8388608, %v4059_v8  ;;  %v1173_v38 = vshrl.u32 %v4659_v18, %v3753_v12 }
 0x1bf   : > { %v1176_v37 = vshrl.u32 %v4662_v63, %v3753_v12  ;;  %vm1756_vm5 = vweird.f32 %v4700_v52  ;;  %vm2273_vm4 = vcmp.lt.s32.totalorder %v2272_v30, 0  ;;  %v1168_v56 = vor.u32 %v1167_v6, %v1166_v35 }
 0x1c0   : > { %v1169_v57 = vshll.u32 %v4660_v49, %v3299_v43  ;;  %v1172_v55 = vshll.u32 %v4661_v0, %v3299_v43  ;;  %v1529_v40 = vsel %vm2273_vm4, 0, %v2272_v30  ;;  %v1929_v28 = vsel %vm1927_vm3, %v1928_v32, %v4054_v61 }
 0x1c1   : > { %v1175_v27 = vshll.u32 %v4659_v18, %v3299_v43  ;;  %v1179_v36 = vshrl.u32 %v4663_v34, %v3753_v12  ;;  %v1530_v62 = vsub.s32 32, %v1529_v40  ;;  %v1534_v29 = vsub.s32 4294967266, %v1529_v40  ;;  %v4714_v12 = vld [vmem:[#allocation23_spill] sm:$0xff] }
 0x1c2   : > { %v1930_v20 = vadd.s32 %v1929_v28, %v1925_v58  ;;  %v1171_v21 = vor.u32 %v1170_v53, %v1169_v57  ;;  %v2465_v26 = vpop.eup %2464  ;;  %v1531_v41 = vshll.u32 %v4022_v33, %v1529_v40  ;;  %v1174_v2 = vor.u32 %v1173_v38, %v1172_v55 }
 0x1c3   : > { %v1177_v24 = vor.u32 %v1176_v37, %v1175_v27  ;;  %v1178_v4 = vshll.u32 %v4662_v63, %v3299_v43  ;;  %v2467_v60 = vpop.eup %2466  ;;  %v1763_v10 = vxor.u32 2147483648, %v2465_v26  ;;  %v1532_v14 = vshrl.u32 %v1514_v42, %v1530_v62 }
 0x1c4   : > { %v1535_v51 = vadd.s32 127, %v1534_v29  ;;  %v1931_v15 = vadd.s32 536870912, %v1930_v20  ;;  %v1760_v17 = vxor.u32 2147483648, %v2467_v60  ;;  %vm1181_vm7 = vcmp.lt.s32.totalorder %v3750_v9, 1 }
 0x1c5   : > { %v1180_v23 = vor.u32 %v1179_v36, %v1178_v4  ;;  %vm1184_vm8 = vcmp.lt.s32.totalorder %v3750_v9, 4  ;;  %vm1596_vm9 = vcmp.lt.s32.totalorder %v4714_v12, 4  ;;  %v1764_v33 = vsel %vm1762_vm1, %v1763_v10, %v2467_v60  ;;  %v4717_v4 = vld [vmem:[#allocation33_spill] sm:$0xff] }
 0x1c6   : > { %v1533_v48 = vor.u32 %v1532_v14, %v1531_v41  ;;  %v1536_v16 = vshll.u32 %v1535_v51, 23  ;;  %v4104_v59 = vshrl.u32 %v1931_v15, 30  ;;  %v1761_v43 = vsel %vm1759_vm2, %v2465_v26, %v1760_v17  ;;  %v4715_v41 = vld [vmem:[#allocation29_spill] sm:$0xff] }
 0x1c7   : > { %vm1182_vm10 = vcmp.lt.s32.totalorder %v3750_v9, 2  ;;  %vm1183_vm11 = vcmp.lt.s32.totalorder %v3750_v9, 3  ;;  %v1190_v61 = vsel %vm1184_vm8, %v1177_v24, 920167782  ;;  %v1765_v8 = vsel %vm1758_vm6, %v1761_v43, %v1764_v33 }
 0x1c8   : > { %v1537_v42 = vor.u32 4788187, %v1536_v16  ;;  %v1933_v13 = vshll.u32 %v4104_v59, 30  ;;  %v1189_v6 = vsel %vm1181_vm7, %v1168_v56, %v1171_v21  ;;  %v1766_v58 = vsel %vm1756_vm5, nan, %v1765_v8  ;;  %v4721_v8 = vld [vmem:[#allocation28_spill] sm:$0xff] }
 0x1c9   : > { %v1186_v30 = vsel %vm1184_vm8, %v1174_v2, 2102212464  ;;  %v1191_v35 = vsel %vm1183_vm11, %v1174_v2, %v1190_v61  ;;  %v1193_v53 = vsel %vm1181_vm7, %v1171_v21, %v1174_v2  ;;  %v2302_v31 = vpack.c.bf16 %v1766_v58, %v4066_v25  ;;  %v4722_v58 = vld [vmem:[#allocation24_spill] sm:$0xff] }
 0x1ca   : > { %v1538_v32 = vand.u32 2147483647, %v1537_v42  ;;  %v1540_v38 = vcvt.s32.f32 %v1533_v48  ;;  %v4126_v37 = vsub.s32 %v1930_v20, %v1933_v13  ;;  %v1185_v57 = vsel %vm1181_vm7, %v1165_v46, %v1168_v56 }
 0x1cb   : > { %v1192_v52 = vsel %vm1182_vm10, %v1189_v6, %v1191_v35  ;;  %v1194_v55 = vsel %vm1184_vm8, %v1180_v23, 1326507024  ;;  %v1197_v40 = vshll.u32 %v1157_v5, 8  ;;  %2303 = vmatprep.subr.bf16.mxu0 %v2302_v31  ;;  %v1187_v25 = vsel %vm1183_vm11, %v1171_v21, %v1186_v30  ;;  %v4716_v21 = vld [vmem:[#allocation30_spill] sm:$0xff]  ;;  %v4720_v23 = vld [vmem:[#allocation8_spill] sm:$0xff] }
 0x1cc   : > { %v1541_v28 = vmul.f32 %v1540_v38, %v1538_v32  ;;  %v1936_v27 = vsub.s32 0, %v4126_v37  ;;  %v1195_v36 = vsel %vm1183_vm11, %v1177_v24, %v1194_v55  ;;  %vm1366_vm12 = vcmp.gt.s32.totalorder %v4051_v3, 0 }
 0x1cd   : > { %v1196_v46 = vsel %vm1182_vm10, %v1193_v53, %v1195_v36  ;;  %v4142_v56 = vmul.u32.u64.low %v1197_v40, %v1192_v52  ;;  %v4143_v62 = vmul.u32.u64.high %v1197_v40, %v1192_v52, %v4142_v56  ;;  %v1592_v2 = vor.u32 %v4716_v21, %v4715_v41 }
 0x1ce   : > { %v1542_v5 = vxor.u32 2147483648, %v1541_v28  ;;  %v2287_v29 = vmin.u32 %v1936_v27, %v4126_v37  ;;  %v4147_v20 = vmul.u32.u64.low %v1197_v40, %v1196_v46  ;;  %v4148_v26 = vmul.u32.u64.high %v1197_v40, %v1196_v46, %v4147_v20 }
 0x1cf   : > { %v1602_v24 = vsel %vm1596_vm9, %v4717_v4, 920167782  ;;  %vm1460_vm13 = vcmp.lt.s32.totalorder %v4701_v47, 0  ;;  %v1188_v60 = vsel %vm1182_vm10, %v1185_v57, %v1187_v25  ;;  %vm4160_vm14 = vcmp.le.f32.partialorder %v1458_v19, 0.7853982 }
 0x1d0   : > { %v1543_v14 = vsel %vm1460_vm13, %v1542_v5, %v1541_v28  ;;  %v1545_v51 = vsel %vm1460_vm13, %v1544_v22, %v4007_v39  ;;  %v1938_v15 = vclz %v2287_v29  ;;  %v4170_v17 = vsel %vm1366_vm12, %v4051_v3, 0 }
 0x1d1   : > { %v1546_v9 = vsel %vm4160_vm14, %v4701_v47, %v1543_v14  ;;  %v1207_v19 = vadd.s32 1, %v4143_v62  ;;  %v1561_v33 = vand.u32 2147483647, %v4720_v23  ;;  %vm1872_vm0 = vcmp.lt.s32.totalorder %v4707_v7, 0 }
 0x1d2   : > { %2468 = vcosq.f32 %v1546_v9  ;;  %v2288_v48 = vadd.s32 4294967294, %v1938_v15  ;;  %v1204_v16 = vmul.u32 %v1197_v40, %v1188_v60  ;;  %vm1206_vm15 = vc.u32 %v4148_v26, %v4142_v56 }
 0x1d3   : > { %v1547_v39 = vsel %vm4160_vm14, 0, %v1545_v51  ;;  %2470 = vsinq.f32 %v1546_v9  ;;  %v1926_v3 = vadd.s32 %v4053_v44, %v4045_v50  ;;  %v1208_v22 = vsel %vm1206_vm15, %v1207_v19, %v4143_v62 }
 0x1d4   : > { %vm2289_vm1 = vcmp.lt.s32.totalorder %v2288_v48, 0  ;;  %v1956_v43 = vsub.s32 4, %v4104_v59  ;;  %v1209_v61 = vadd.s32 %v1208_v22, %v1204_v16  ;;  %v1579_v42 = vshrl.u32 %v4660_v49, %v4721_v8 }
 0x1d5   : > { %v1941_v13 = vsel %vm2289_vm1, 0, %v2288_v48  ;;  %v1568_v6 = vand.u32 8388607, %v1561_v33  ;;  %v1578_v30 = vshll.u32 %v4657_v11, %v4722_v58  ;;  %v1582_v35 = vshrl.u32 %v4661_v0, %v4721_v8 }
 0x1d6   : > { %v1942_v50 = vsub.s32 32, %v1941_v13  ;;  %v1946_v44 = vsub.s32 4294967266, %v1941_v13  ;;  %v1210_v53 = vadd.s32 536870912, %v1209_v61  ;;  %v1581_v31 = vshll.u32 %v4660_v49, %v4722_v58 }
 0x1d7   : > { %v1943_v32 = vshll.u32 %v4126_v37, %v1941_v13  ;;  %v1580_v38 = vor.u32 %v1579_v42, %v1578_v30  ;;  %v1584_v57 = vshll.u32 %v4661_v0, %v4722_v58  ;;  %v1585_v52 = vshrl.u32 %v4659_v18, %v4721_v8 }
 0x1d8   : > { %v1944_v55 = vshrl.u32 %v1926_v3, %v1942_v50  ;;  %v1947_v40 = vadd.s32 127, %v1946_v44  ;;  %v4201_v28 = vshrl.u32 %v1210_v53, 30  ;;  %v1583_v27 = vor.u32 %v1582_v35, %v1581_v31 }
 0x1d9   : > { %v1606_v25 = vsel %vm1596_vm9, %v1592_v2, 1326507024  ;;  %v4206_v36 = vand.u32 31, %v4170_v17  ;;  %vm4210_vm2 = vcmp.le.f32.partialorder %v1870_v1, 0.7853982  ;;  %v1586_v46 = vor.u32 %v1585_v52, %v1584_v57  ;;  %v4725_v57 = vld [vmem:[#allocation27_spill] sm:$0xff] }
 0x1da   : > { %v1551_v62 = vand.u32 3, %v1547_v39  ;;  %v1945_v5 = vor.u32 %v1944_v55, %v1943_v32  ;;  %v1948_v29 = vshll.u32 %v1947_v40, 23  ;;  %v1212_v20 = vshll.u32 %v4201_v28, 30 }
 0x1db   : > { %v1957_v41 = vsel %vm1872_vm0, %v1956_v43, %v4104_v59  ;;  %v1569_v21 = vor.u32 8388608, %v1568_v6  ;;  %vm1593_vm3 = vcmp.lt.s32.totalorder %v4714_v12, 1  ;;  %vm1595_vm6 = vcmp.lt.s32.totalorder %v4714_v12, 3 }
 0x1dc   : > { %v2469_v2 = vpop.eup %2468  ;;  %v1949_v1 = vor.u32 4788187, %v1948_v29  ;;  %v4220_v60 = vsub.s32 %v1209_v61, %v1212_v20  ;;  %v1598_v10 = vsel %vm1596_vm9, %v1586_v46, 2102212464  ;;  %v1601_v14 = vsel %vm1593_vm3, %v1580_v38, %v1583_v27  ;;  %v4726_v20 = vld [vmem:[#allocation11_spill] sm:$0xff] }
 0x1dd   : > { %v2471_v51 = vpop.eup %2470  ;;  %v1952_v15 = vcvt.s32.f32 %v1945_v5  ;;  %v1603_v59 = vsel %vm1595_vm6, %v1586_v46, %v1602_v24  ;;  %v1605_v9 = vsel %vm1593_vm3, %v1583_v27, %v1586_v46  ;;  %v1607_v19 = vsel %vm1595_vm6, %v4717_v4, %v1606_v25 }
 0x1de   : > { %v1554_v48 = vxor.u32 2147483648, %v2471_v51  ;;  %v1557_v16 = vxor.u32 2147483648, %v2469_v2  ;;  %v1950_v39 = vand.u32 2147483647, %v1949_v1  ;;  %v1215_v3 = vsub.s32 0, %v4220_v60 }
 0x1df   : > { %vm1553_vm5 = vcmp.eq.s32.totalorder %v1551_v62, 0  ;;  %vm1556_vm4 = vcmp.eq.s32.totalorder %v1551_v62, 2  ;;  %v1577_v22 = vshrl.u32 %v4657_v11, %v4721_v8  ;;  %vm1594_vm7 = vcmp.lt.s32.totalorder %v4714_v12, 2 }
 0x1e0   : > { %v1953_v24 = vmul.f32 %v1952_v15, %v1950_v39  ;;  %v2259_v43 = vmin.u32 %v1215_v3, %v4220_v60  ;;  %v1604_v61 = vsel %vm1594_vm7, %v1601_v14, %v1603_v59  ;;  %v1608_v4 = vsel %vm1594_vm7, %v1605_v9, %v1607_v19 }
 0x1e1   : > { %v1959_v42 = vsel %vm4210_vm2, 0, %v1957_v41  ;;  %v1597_v13 = vsel %vm1593_vm3, %v1577_v22, %v1580_v38  ;;  %v1599_v8 = vsel %vm1595_vm6, %v1583_v27, %v1598_v10  ;;  %v1609_v6 = vshll.u32 %v1569_v21, 8 }
 0x1e2   : > { %v1555_v58 = vsel %vm1553_vm5, %v2469_v2, %v1554_v48  ;;  %v1558_v30 = vsel %vm1556_vm4, %v1557_v16, %v2471_v51  ;;  %v1954_v35 = vxor.u32 2147483648, %v1953_v24  ;;  %v1217_v50 = vclz %v2259_v43 }
 0x1e3   : > { %v4248_v44 = vmul.u32.u64.low %v1609_v6, %v1608_v4  ;;  %v4249_v53 = vmul.u32.u64.high %v1609_v6, %v1608_v4, %v4248_v44  ;;  %v4251_v31 = vmul.u32.u64.low %v1609_v6, %v1604_v61  ;;  %v4252_v32 = vmul.u32.u64.high %v1609_v6, %v1604_v61, %v4251_v31 }
 0x1e4   : > { %v4257_v52 = vshll.u32 %v4662_v63, %v4725_v57  ;;  %v1370_v38 = vsub.s32 32, %v4206_v36  ;;  %v1955_v55 = vsel %vm1872_vm0, %v1954_v35, %v1953_v24  ;;  %v2260_v40 = vadd.s32 4294967294, %v1217_v50 }
 0x1e5   : > { %vm1550_vm8 = vweird.f32 %v4701_v47  ;;  %vm1552_vm9 = vcmp.lt.s32.totalorder %v1551_v62, 2  ;;  %v1958_v27 = vsel %vm4210_vm2, %v4707_v7, %v1955_v55  ;;  %v4266_v25 = vand.u32 3, %v1959_v42 }
 0x1e6   : > { %v1559_v46 = vsel %vm1552_vm9, %v1555_v58, %v1558_v30  ;;  %2472 = vcosq.f32 %v1958_v27  ;;  %vm2261_vm10 = vcmp.lt.s32.totalorder %v2260_v40, 0  ;;  %v1600_v5 = vsel %vm1594_vm7, %v1597_v13, %v1599_v8 }
 0x1e7   : > { %2474 = vsinq.f32 %v1958_v27  ;;  %v1220_v29 = vsel %vm2261_vm10, 0, %v2260_v40  ;;  %vm1618_vm11 = vc.u32 %v4249_v53, %v4251_v31  ;;  %v1355_v41 = vand.u32 2147483647, %v4726_v20 }
 0x1e8   : > { %v1205_v62 = vadd.s32 %v4142_v56, %v4148_v26  ;;  %v1221_v37 = vsub.s32 32, %v1220_v29  ;;  %v1225_v21 = vsub.s32 4294967266, %v1220_v29  ;;  %v1619_v2 = vadd.s32 1, %v4252_v32 }
 0x1e9   : > { %v4277_v1 = vshrl.u32 %v4170_v17, 5  ;;  %v4281_v12 = vsel %vm1550_vm8, nan, %v1559_v46  ;;  %v1616_v10 = vmul.u32 %v1609_v6, %v1600_v5  ;;  %v1373_v14 = vshrl.u32 %v4660_v49, %v1370_v38 }
 0x1ea   : > { %vm1968_vm12 = vcmp.eq.s32.totalorder %v4266_v25, 2  ;;  %v1222_v51 = vshll.u32 %v4220_v60, %v1220_v29  ;;  %v1223_v15 = vshrl.u32 %v1205_v62, %v1221_v37  ;;  %v1226_v56 = vadd.s32 127, %v1225_v21 }
 0x1eb   : > { %v1620_v26 = vsel %vm1618_vm11, %v1619_v2, %v4252_v32  ;;  %vm1965_vm13 = vcmp.eq.s32.totalorder %v4266_v25, 0  ;;  %v1362_v17 = vand.u32 8388607, %v1355_v41  ;;  %v1376_v47 = vshrl.u32 %v4661_v0, %v1370_v38 }
 0x1ec   : > { %v1621_v59 = vadd.s32 %v1620_v26, %v1616_v10  ;;  %v1379_v9 = vshrl.u32 %v4659_v18, %v1370_v38  ;;  %vm1964_vm14 = vcmp.lt.s32.totalorder %v4266_v25, 2  ;;  %v1224_v19 = vor.u32 %v1223_v15, %v1222_v51  ;;  %v4727_v25 = vld [vmem:[#allocation31_spill] sm:$0xff] }
 0x1ed   : > { %v1227_v48 = vshll.u32 %v1226_v56, 23  ;;  %v1381_v60 = vshll.u32 %v4659_v18, %v4206_v36  ;;  %v1382_v16 = vshrl.u32 %v4662_v63, %v1370_v38  ;;  %vm1962_vm0 = vweird.f32 %v4707_v7 }
 0x1ee   : > { %v1622_v39 = vadd.s32 536870912, %v1621_v59  ;;  %v1371_v3 = vshrl.u32 %v4657_v11, %v1370_v38  ;;  %v1372_v22 = vshll.u32 %v4657_v11, %v4206_v36  ;;  %v1378_v24 = vshll.u32 %v4661_v0, %v4206_v36 }
 0x1ef   : > { %v1228_v43 = vor.u32 4788187, %v1227_v48  ;;  %v1375_v61 = vshll.u32 %v4660_v49, %v4206_v36  ;;  %v1383_v4 = vor.u32 %v1382_v16, %v1381_v60  ;;  %v1385_v42 = vshrl.u32 %v4663_v34, %v1370_v38 }
 0x1f0   : > { %v4305_v13 = vshrl.u32 %v1622_v39, 30  ;;  %v1363_v8 = vor.u32 8388608, %v1362_v17  ;;  %v1374_v6 = vor.u32 %v1373_v14, %v1372_v22  ;;  %v1380_v58 = vor.u32 %v1379_v9, %v1378_v24  ;;  %v2473_v30 = vpop.eup %2472 }
 0x1f1   : > { %v1229_v35 = vand.u32 2147483647, %v1228_v43  ;;  %v1231_v50 = vcvt.s32.f32 %v1224_v19  ;;  %v1377_v44 = vor.u32 %v1376_v47, %v1375_v61  ;;  %v1384_v32 = vshll.u32 %v4662_v63, %v4206_v36  ;;  %v2475_v55 = vpop.eup %2474 }
 0x1f2   : > { %v1969_v40 = vxor.u32 2147483648, %v2473_v30  ;;  %v1624_v27 = vshll.u32 %v4305_v13, 30  ;;  %vm1387_vm15 = vcmp.lt.s32.totalorder %v4277_v1, 1  ;;  %vm1390_vm1 = vcmp.lt.s32.totalorder %v4277_v1, 4 }
 0x1f3   : > { %v1966_v38 = vxor.u32 2147483648, %v2475_v55  ;;  %v1232_v46 = vmul.f32 %v1231_v50, %v1229_v35  ;;  %v1386_v5 = vor.u32 %v1385_v42, %v1384_v32  ;;  %v1396_v29 = vsel %vm1390_vm1, %v1383_v4, 920167782  ;;  %v4732_v35 = vld [vmem:[#allocation9_spill] sm:$0xff] }
 0x1f4   : > { %v1970_v62 = vsel %vm1968_vm12, %v1969_v40, %v2475_v55  ;;  %v4316_v37 = vsub.s32 %v1621_v59, %v1624_v27  ;;  %vm1389_vm2 = vcmp.lt.s32.totalorder %v4277_v1, 3  ;;  %v1392_v36 = vsel %vm1390_vm1, %v1380_v58, 2102212464 }
 0x1f5   : > { %v1967_v21 = vsel %vm1965_vm13, %v2473_v30, %v1966_v38  ;;  %vm1388_vm3 = vcmp.lt.s32.totalorder %v4277_v1, 2  ;;  %v1395_v2 = vsel %vm1387_vm15, %v1374_v6, %v1377_v44  ;;  %v1397_v10 = vsel %vm1389_vm2, %v1380_v58, %v1396_v29 }
 0x1f6   : > { %v1971_v14 = vsel %vm1964_vm14, %v1967_v21, %v1970_v62  ;;  %v1233_v51 = vxor.u32 2147483648, %v1232_v46  ;;  %v1627_v15 = vsub.s32 0, %v4316_v37  ;;  %v1391_v56 = vsel %vm1387_vm15, %v1371_v3, %v1374_v6 }
 0x1f7   : > { %v1972_v26 = vsel %vm1962_vm0, nan, %v1971_v14  ;;  %v1393_v59 = vsel %vm1389_vm2, %v1377_v44, %v1392_v36  ;;  %v1399_v17 = vsel %vm1387_vm15, %v1377_v44, %v1380_v58  ;;  %v1400_v47 = vsel %vm1390_vm1, %v1386_v5, 1326507024 }
 0x1f8   : > { %v1794_v9 = vshrl.u32 %v4662_v63, %v4727_v25  ;;  %v2310_v19 = vpack.c.bf16 %v1972_v26, %v4281_v12  ;;  %v2275_v48 = vmin.u32 %v1627_v15, %v4316_v37  ;;  %v1398_v7 = vsel %vm1388_vm3, %v1395_v2, %v1397_v10 }
 0x1f9   : > { %v1797_v60 = vshrl.u32 %v4663_v34, %v4727_v25  ;;  %vm1151_vm6 = vcmp.lt.s32.totalorder %v4712_v45, 0  ;;  %v1401_v16 = vsel %vm1389_vm2, %v1383_v4, %v1400_v47  ;;  %v1403_v39 = vshll.u32 %v1363_v8, 8  ;;  %v4728_v4 = vld [vmem:[#allocation32_spill] sm:$0xff]  ;;  %v4729_v8 = vld [vmem:[#allocation26_spill] sm:$0xff] }
 0x1fa   : > { %2311 = vmatprep.subr.bf16.mxu1 %v2310_v19  ;;  %v1234_v63 = vsel %vm1151_vm6, %v1233_v51, %v1232_v46  ;;  %v1629_v3 = vclz %v2275_v48  ;;  %v1394_v12 = vsel %vm1388_vm3, %v1391_v56, %v1393_v59  ;;  %v1402_v22 = vsel %vm1388_vm3, %v1399_v17, %v1401_v16 }
 0x1fb   : > { %v4358_v24 = vmul.u32.u64.low %v1403_v39, %v1402_v22  ;;  %v4359_v43 = vmul.u32.u64.high %v1403_v39, %v1402_v22, %v4358_v24  ;;  %v4361_v34 = vmul.u32.u64.low %v1403_v39, %v1398_v7  ;;  %v4362_v61 = vmul.u32.u64.high %v1403_v39, %v1398_v7, %v4361_v34 }
 0x1fc   : > { %v1795_v42 = vor.u32 %v1794_v9, %v4728_v4  ;;  %vm1802_vm5 = vcmp.lt.s32.totalorder %v4729_v8, 4  ;;  %v2276_v6 = vadd.s32 4294967294, %v1629_v3  ;;  %v1798_v58 = vor.u32 %v1797_v60, %v4257_v52 }
 0x1fd   : > { %vm4370_vm4 = vcmp.le.f32.partialorder %v1149_v54, 0.7853982  ;;  %v1617_v1 = vadd.s32 %v4251_v31, %v4249_v53  ;;  %v1767_v50 = vand.u32 2147483647, %v4732_v35  ;;  %v1410_v32 = vmul.u32 %v1403_v39, %v1394_v12 }
 0x1fe   : > { %v1237_v44 = vsel %vm4370_vm4, %v4712_v45, %v1234_v63  ;;  %vm2277_vm7 = vcmp.lt.s32.totalorder %v2276_v6, 0  ;;  %v1785_v52 = vshrl.u32 %v4660_v49, %v4727_v25  ;;  %vm1412_vm8 = vc.u32 %v4359_v43, %v4361_v34 }
 0x1ff   : > { %v1632_v55 = vsel %vm2277_vm7, 0, %v2276_v6  ;;  %v1413_v54 = vadd.s32 1, %v4362_v61  ;;  %v1788_v53 = vshrl.u32 %v4661_v0, %v4727_v25  ;;  %v1784_v27 = vshll.u32 %v4657_v11, %v4725_v57 }
 0x200   : > { %v1633_v31 = vsub.s32 32, %v1632_v55  ;;  %v1637_v40 = vsub.s32 4294967266, %v1632_v55  ;;  %v1787_v38 = vshll.u32 %v4660_v49, %v4725_v57  ;;  %v1774_v5 = vand.u32 8388607, %v1767_v50 }
 0x201   : > { %v1414_v46 = vsel %vm1412_vm8, %v1413_v54, %v4362_v61  ;;  %v1790_v29 = vshll.u32 %v4661_v0, %v4725_v57  ;;  %v1791_v62 = vshrl.u32 %v4659_v18, %v4727_v25  ;;  %v1634_v36 = vshll.u32 %v4316_v37, %v1632_v55 }
 0x202   : > { %v1635_v21 = vshrl.u32 %v1617_v1, %v1633_v31  ;;  %v1638_v2 = vadd.s32 127, %v1637_v40  ;;  %v1415_v10 = vadd.s32 %v1414_v46, %v1410_v32  ;;  %v1808_v14 = vsel %vm1802_vm5, %v1795_v42, 920167782 }
 0x203   : > { %v1786_v49 = vor.u32 %v1785_v52, %v1784_v27  ;;  %v1789_v51 = vor.u32 %v1788_v53, %v1787_v38  ;;  %v1792_v15 = vor.u32 %v1791_v62, %v1790_v29  ;;  %2476 = vcosq.f32 %v1237_v44 }
 0x204   : > { %v1636_v56 = vor.u32 %v1635_v21, %v1634_v36  ;;  %v1639_v26 = vshll.u32 %v1638_v2, 23  ;;  %v1416_v59 = vadd.s32 536870912, %v1415_v10  ;;  %v1812_v0 = vsel %vm1802_vm5, %v1798_v58, 1326507024 }
 0x205   : > { %2478 = vsinq.f32 %v1237_v44  ;;  %v1775_v18 = vor.u32 8388608, %v1774_v5  ;;  %vm1799_vm9 = vcmp.lt.s32.totalorder %v4729_v8, 1  ;;  %vm1801_vm10 = vcmp.lt.s32.totalorder %v4729_v8, 3 }
 0x206   : > { %v1640_v57 = vor.u32 4788187, %v1639_v26  ;;  %v4403_v37 = vshrl.u32 %v1416_v59, 30  ;;  %v1235_v17 = vsub.s32 4, %v4201_v28  ;;  %v1807_v47 = vsel %vm1799_vm9, %v1786_v49, %v1789_v51 }
 0x207   : > { %v1809_v9 = vsel %vm1801_vm10, %v1792_v15, %v1808_v14  ;;  %v1811_v19 = vsel %vm1799_vm9, %v1789_v51, %v1792_v15  ;;  %v1643_v7 = vcvt.s32.f32 %v1636_v56  ;;  %v1783_v16 = vshrl.u32 %v4657_v11, %v4727_v25 }
 0x208   : > { %v1641_v48 = vand.u32 2147483647, %v1640_v57  ;;  %v1418_v60 = vshll.u32 %v4403_v37, 30  ;;  %vm1800_vm11 = vcmp.lt.s32.totalorder %v4729_v8, 2  ;;  %v1804_v39 = vsel %vm1802_vm5, %v1792_v15, 2102212464 }
 0x209   : > { %v1813_v63 = vsel %vm1801_vm10, %v1795_v42, %v1812_v0  ;;  %v1815_v3 = vshll.u32 %v1775_v18, 8  ;;  %v1810_v24 = vsel %vm1800_vm11, %v1807_v47, %v1809_v9  ;;  %vm1563_vm12 = vcmp.lt.s32.totalorder %v4720_v23, 0 }
 0x20a   : > { %v1644_v12 = vmul.f32 %v1643_v7, %v1641_v48  ;;  %v1419_v22 = vsub.s32 %v1415_v10, %v1418_v60  ;;  %v1814_v61 = vsel %vm1800_vm11, %v1811_v19, %v1813_v63  ;;  %v1236_v11 = vsel %vm1151_vm6, %v1235_v17, %v4201_v28 }
 0x20b   : > { %v4430_v25 = vmul.u32.u64.low %v1815_v3, %v1814_v61  ;;  %v4431_v4 = vmul.u32.u64.high %v1815_v3, %v1814_v61, %v4430_v25  ;;  %v1803_v58 = vsel %vm1799_vm9, %v1783_v16, %v1786_v49  ;;  %v1805_v1 = vsel %vm1801_vm10, %v1789_v51, %v1804_v39 }
 0x20c   : > { %v1645_v6 = vxor.u32 2147483648, %v1644_v12  ;;  %v1421_v42 = vsub.s32 0, %v1419_v22  ;;  %v1647_v44 = vsub.s32 4, %v4305_v13  ;;  %v1238_v28 = vsel %vm4370_vm4, 0, %v1236_v11 }
 0x20d   : > { %v4438_v32 = vmul.u32.u64.low %v1815_v3, %v1810_v24  ;;  %v4439_v52 = vmul.u32.u64.high %v1815_v3, %v1810_v24, %v4438_v32  ;;  %v2477_v55 = vpop.eup %2476  ;;  %vm4446_vm13 = vcmp.le.f32.partialorder %v1561_v33, 0.7853982  ;;  %v2563_v40 = vmov 0.0  }
 0x20e   : > { %v1646_v53 = vsel %vm1563_vm12, %v1645_v6, %v1644_v12  ;;  %v2267_v31 = vmin.u32 %v1421_v42, %v1419_v22  ;;  %2048 = vmatprep.mubr.f32.mxu0 %v2563_v40  ;;  %2119 = vmatprep.mubr.f32.mxu1 %v2563_v40  ;;  %v1806_v30 = vsel %vm1800_vm11, %v1803_v58, %v1805_v1  ;;  %v1242_v46 = vand.u32 3, %v1238_v28 }
 0x20f   : > { %v2479_v27 = vpop.eup %2478  ;;  %v1649_v38 = vsel %vm4446_vm13, %v4720_v23, %v1646_v53  ;;  %vm1824_vm14 = vc.u32 %v4431_v4, %v4438_v32  ;;  %v1648_v5 = vsel %vm1563_vm12, %v1647_v44, %v4305_v13  ;;  %v1825_v29 = vadd.s32 1, %v4439_v52  ;;  %v4476_v44 = vld [vmem:[%s4569_s3] sm:$0x3] }
 0x210   : > { %2480 = vcosq.f32 %v1649_v38  ;;  %v1423_v33 = vclz %v2267_v31  ;;  %v1822_v36 = vmul.u32 %v1815_v3, %v1806_v30  ;;  %v1245_v21 = vxor.u32 2147483648, %v2479_v27 }
 0x211   : > { %2482 = vsinq.f32 %v1649_v38  ;;  %v1248_v2 = vxor.u32 2147483648, %v2477_v55  ;;  %v1826_v8 = vsel %vm1824_vm14, %v1825_v29, %v4439_v52  ;;  %v1650_v10 = vsel %vm4446_vm13, 0, %v1648_v5 }
 0x212   : > { %v2268_v62 = vadd.s32 4294967294, %v1423_v33  ;;  %v1827_v14 = vadd.s32 %v1826_v8, %v1822_v36  ;;  %vm1244_vm15 = vcmp.eq.s32.totalorder %v1242_v46, 0  ;;  %vm1247_vm1 = vcmp.eq.s32.totalorder %v1242_v46, 2 }
 0x213   : > { %v1411_v13 = vadd.s32 %v4361_v34, %v4359_v43  ;;  %v1246_v26 = vsel %vm1244_vm15, %v2477_v55, %v1245_v21  ;;  %v1249_v59 = vsel %vm1247_vm1, %v1248_v2, %v2479_v27  ;;  %v1654_v0 = vand.u32 3, %v1650_v10 }
 0x214   : > { %vm2269_vm0 = vcmp.lt.s32.totalorder %v2268_v62, 0  ;;  %v1828_v56 = vadd.s32 536870912, %v1827_v14  ;;  %vm1243_vm2 = vcmp.lt.s32.totalorder %v1242_v46, 2  ;;  %vm1241_vm3 = vweird.f32 %v4712_v45 }
 0x215   : > { %v1426_v49 = vsel %vm2269_vm0, 0, %v2268_v62  ;;  %v1250_v19 = vsel %vm1243_vm2, %v1246_v26, %v1249_v59  ;;  %vm1659_vm6 = vcmp.eq.s32.totalorder %v1654_v0, 2  ;;  %vm1655_vm5 = vcmp.lt.s32.totalorder %v1654_v0, 2 }
 0x216   : > { %v1427_v51 = vsub.s32 32, %v1426_v49  ;;  %v1431_v15 = vsub.s32 4294967266, %v1426_v49  ;;  %v1428_v18 = vshll.u32 %v1419_v22, %v1426_v49  ;;  %v4468_v47 = vshrl.u32 %v1828_v56, 30 }
 0x217   : > { %v1251_v3 = vsel %vm1241_vm3, nan, %v1250_v19  ;;  %vm1656_vm4 = vcmp.eq.s32.totalorder %v1654_v0, 0  ;;  %vm1653_vm7 = vweird.f32 %v4720_v23  ;;  %vm1980_vm8 = vcmask 261120  }
 0x218   : > { %v1429_v57 = vshrl.u32 %v1411_v13, %v1427_v51  ;;  %v1432_v17 = vadd.s32 127, %v1431_v15  ;;  %v1830_v60 = vshll.u32 %v4468_v47, 30  ;;  %vm1357_vm10 = vcmp.lt.s32.totalorder %v4726_v20, 0 }
 0x219   : > { %v1823_v54 = vadd.s32 %v4438_v32, %v4431_v4  ;;  %vm4487_vm11 = vcmp.le.f32.partialorder %v1355_v41, 0.7853982  ;;  %v1441_v62 = vsub.s32 4, %v4403_v37  ;;  %vm1769_vm12 = vcmp.lt.s32.totalorder %v4732_v35, 0 }
 0x21a   : > { %v2481_v9 = vpop.eup %2480  ;;  %v1430_v48 = vor.u32 %v1429_v57, %v1428_v18  ;;  %v1433_v7 = vshll.u32 %v1432_v17, 23  ;;  %v1831_v63 = vsub.s32 %v1827_v14, %v1830_v60  ;;  %vm4501_vm13 = vcmp.le.f32.partialorder %v1767_v50, 0.7853982 }
 0x21b   : > { %v2483_v16 = vpop.eup %2482  ;;  %v1660_v43 = vxor.u32 2147483648, %v2481_v9  ;;  %v1442_v21 = vsel %vm1357_vm10, %v1441_v62, %v4403_v37  ;;  %v1853_v10 = vsub.s32 4, %v4468_v47  ;;  %vm1447_vm2 = vweird.f32 %v4726_v20 }
 0x21c   : > { %v1657_v34 = vxor.u32 2147483648, %v2483_v16  ;;  %v1434_v39 = vor.u32 4788187, %v1433_v7  ;;  %v1437_v61 = vcvt.s32.f32 %v1430_v48  ;;  %v1833_v11 = vsub.s32 0, %v1831_v63 }
 0x21d   : > { %v1661_v12 = vsel %vm1659_vm6, %v1660_v43, %v2483_v16  ;;  %v1444_v13 = vsel %vm4487_vm11, 0, %v1442_v21  ;;  %v1854_v37 = vsel %vm1769_vm12, %v1853_v10, %v4468_v47 }
 0x21e   : > { %v1658_v22 = vsel %vm1656_vm4, %v2481_v9, %v1657_v34  ;;  %v1435_v24 = vand.u32 2147483647, %v1434_v39  ;;  %v2283_v58 = vmin.u32 %v1833_v11, %v1831_v63  ;;  %v1448_v50 = vand.u32 3, %v1444_v13  ;;  %v1978_v39 = vpop.permute.xlu0 %1977 }
 0x21f   : > { %v1662_v25 = vsel %vm1655_vm5, %v1658_v22, %v1661_v12  ;;  %v1856_v26 = vsel %vm4501_vm13, 0, %v1854_v37  ;;  %vm1859_vm5 = vweird.f32 %v4732_v35 }
 0x220   : > { %v1663_v6 = vsel %vm1653_vm7, nan, %v1662_v25  ;;  %v1438_v42 = vmul.f32 %v1437_v61, %v1435_v24  ;;  %v1835_v1 = vclz %v2283_v58  ;;  %vm1450_vm14 = vcmp.eq.s32.totalorder %v1448_v50, 0  ;;  %v4739_v25 = vld [vmem:[#allocation5_spill] sm:$0xff] }
 0x221   : > { %v2304_v45 = vpack.c.bf16 %v1663_v6, %v1251_v3  ;;  %vm1453_vm0 = vcmp.eq.s32.totalorder %v1448_v50, 2  ;;  %v1860_v18 = vand.u32 3, %v1856_v26  ;;  %vm1449_vm15 = vcmp.lt.s32.totalorder %v1448_v50, 2 }
 0x222   : > { %v1439_v52 = vxor.u32 2147483648, %v1438_v42  ;;  %v2284_v55 = vadd.s32 4294967294, %v1835_v1  ;;  %v2564_v24 = vmov 1983009808  }
 0x223   : > { %2305 = vmatpush1.bf16.msra.mxu0 %v2304_v45  ;;  %vm1865_vm1 = vcmp.eq.s32.totalorder %v1860_v18, 2  ;;  %vm1862_vm3 = vcmp.eq.s32.totalorder %v1860_v18, 0  ;;  %vm1861_vm6 = vcmp.lt.s32.totalorder %v1860_v18, 2  ;;  %v2133_v61 = vunpack.c.l.s4 %v2564_v24 }
 0x224   : > { %vm2285_vm9 = vcmp.lt.s32.totalorder %v2284_v55, 0  ;;  %v1440_v28 = vsel %vm1357_vm10, %v1439_v52, %v1438_v42 }
 0x225   : > { %v1838_v23 = vsel %vm2285_vm9, 0, %v2284_v55  ;;  %v1443_v33 = vsel %vm4487_vm11, %v4726_v20, %v1440_v28  ;;  %v2134_v11 = vunpack.c.0.s8 %v2133_v61 }
 0x226   : > { %2290 = vmatmul.mubr.msk.f32.vlgmr.msra.gmra.mrb[0].mxu0 %vm1980_vm8, %v4476_v44  ;;  %v1839_v53 = vsub.s32 32, %v1838_v23  ;;  %v1843_v31 = vsub.s32 4294967266, %v1838_v23  ;;  %v1840_v27 = vshll.u32 %v1831_v63, %v1838_v23  ;;  %2484 = vcosq.f32 %v1443_v33 }
 0x227   : > { %2486 = vsinq.f32 %v1443_v33  ;;  %v2137_v6 = vsub.s32 %v2134_v11, %v4739_v25 }
 0x228   : > { %v1841_v38 = vshrl.u32 %v1823_v54, %v1839_v53  ;;  %v1844_v30 = vadd.s32 127, %v1843_v31 }
 0x22a   : > { %v1842_v46 = vor.u32 %v1841_v38, %v1840_v27  ;;  %v1845_v5 = vshll.u32 %v1844_v30, 23 }
 0x22c   : > { %v1846_v29 = vor.u32 4788187, %v1845_v5  ;;  %v1849_v32 = vcvt.s32.f32 %v1842_v46 }
 0x22e   : > { %v1847_v4 = vand.u32 2147483647, %v1846_v29 }
 0x230   : > { %v1850_v41 = vmul.f32 %v1849_v32, %v1847_v4  ;;  %v2485_v49 = vpop.eup %2484 }
 0x231   : > { %v2487_v51 = vpop.eup %2486  ;;  %v1454_v56 = vxor.u32 2147483648, %v2485_v49 }
 0x232   : > { %v1851_v36 = vxor.u32 2147483648, %v1850_v41  ;;  %v1451_v15 = vxor.u32 2147483648, %v2487_v51 }
 0x233   : > { %v1455_v0 = vsel %vm1453_vm0, %v1454_v56, %v2487_v51 }
 0x234   : > { %v1852_v8 = vsel %vm1769_vm12, %v1851_v36, %v1850_v41  ;;  %v1452_v59 = vsel %vm1450_vm14, %v2485_v49, %v1451_v15 }
 0x235   : > { %v1855_v14 = vsel %vm4501_vm13, %v4732_v35, %v1852_v8  ;;  %v1456_v9 = vsel %vm1449_vm15, %v1452_v59, %v1455_v0 }
 0x236   : > { %2488 = vcosq.f32 %v1855_v14  ;;  %v1457_v7 = vsel %vm1447_vm2, nan, %v1456_v9 }
 0x237   : > { %2490 = vsinq.f32 %v1855_v14 }
 0x240   : > { %v2489_v57 = vpop.eup %2488 }
 0x241   : > { %v2491_v17 = vpop.eup %2490  ;;  %v1866_v19 = vxor.u32 2147483648, %v2489_v57 }
 0x242   : > { %v1863_v48 = vxor.u32 2147483648, %v2491_v17 }
 0x243   : > { %v1867_v47 = vsel %vm1865_vm1, %v1866_v19, %v2491_v17 }
 0x244   : > { %v1864_v60 = vsel %vm1862_vm3, %v2489_v57, %v1863_v48 }
 0x245   : > { %v1868_v16 = vsel %vm1861_vm6, %v1864_v60, %v1867_v47 }
 0x246   : > { %v1869_v43 = vsel %vm1859_vm5, nan, %v1868_v16 }
 0x247   : > { %v2312_v34 = vpack.c.bf16 %v1869_v43, %v1457_v7 }
 0x249   : > { %2313 = vmatpush1.bf16.msra.mxu1 %v2312_v34 }
 0x24c   : > { %2291 = vmatmul.mubr.msk.f32.vlgmr.msra.gmra.mrb[0].mxu1 %vm1980_vm8, %v4476_v44 }
 0x2f9   : > { %v2050_v63 = vpop.f32.mrb[0].mxu0 }
 0x2fa   : > { %v2051_v3 = vadd.f32 %v2050_v63, %v1978_v39  ;;  %v2052_v20 = vpop.f32.mrb[1].mxu0 }
 0x2fb   : > { %v2053_v12 = vadd.f32 %v2052_v20, %v1978_v39 }
 0x2fd   : > { %v2130_v22 = vcombine.low %v2051_v3, %v2053_v12 }
 0x2ff   : > { %v2138_v1 = vrot.slane %v2130_v22, %v2137_v6 }
 0x31f   : > { %v2121_v35 = vpop.f32.mrb[0].mxu1 }
 0x320   : > { %v2122_v42 = vadd.f32 %v2121_v35, %v1978_v39  ;;  %v2123_v58 = vpop.f32.mrb[1].mxu1 }
 0x321   : > { %v2124_v45 = vadd.f32 %v2123_v58, %v1978_v39 }
 0x323   : > { %v2131_v44 = vcombine.low %v2122_v42, %v2124_v45 }
 0x325   : > { %v2145_v52 = vrot.slane %v2131_v44, %v2137_v6 }
 0x327   : > { %v2146_v55 = vcombine.low %v2138_v1, %v2145_v52 }
 0x329   : > { %2148 = vst [vmem:[%s216_s16] sm:$0xff] %v2146_v55 }
 0x32a   : > { %2505 = shalt.err (!%p2502_p3)
}
 0x32b   : > { %s2506_s9 = scalar_lea.hbm %s4524_s26, 128  ;;  %s2510_s12 = scalar_lea.hbm %s4571_s5, 256 }
 0x32c   : > { %p2507_p4 = scmp.ne.s32.totalorder %s4524_s26, %s2506_s9  ;;  %p2511_p9 = scmp.lt.u32.totalorder %s4524_s26, %s4571_s5 }
 0x32d   : > { %p2512_p10 = scmp.lt.u32.totalorder %s2510_s12, %s2506_s9  ;;  %p2514_p12 = scmp.lt.u32.totalorder %s2506_s9, %s4524_s26 }
 0x32e   : > { %p2508_p7 = pnand %p2507_p4, %p2634_p5 }
 0x32f   : > { %p2513_p11 = por %p2512_p10, %p2511_p9 }
 0x330   : > { %p2509_p8 = pneg %p2508_p7 }
 0x331   : > { %p2515_p13 = por %p2514_p12, %p2513_p11 }
 0x333   : > { %p2516_p0 = pnand %p2515_p13, %p2509_p8 }
 0x335   : > { %2519 = shalt.err (!%p2516_p0)
}
 0x336   : > { %2378 = dma.vmem_to_hbm [thread:$0]  (%p2634_p5), %s4526_s17, 128, %s4524_s26, %s2150_s30  }
 0x337 PF: > { %p2384_p1 = scmp.ge.s32.totalorder %s2554_s21, 2  ;;  %s2176_s15 = sand.u32 1, %s2542_s18  }
 0x338   : > { %s2177_s16 = scalar_lea.sflag [#allocation3], %s2176_s15 }
 0x339   : > { %p2381_p2 = pnand %p2384_p1, %p2638_p6 }
 0x33b   : > { %2537 = dma.done.wait (!%p2381_p2), %s2177_s16, 128  }
 0x33c   : > { %2539 = vsyncadd (!%p2381_p2), %s2177_s16, 4294967168  ;;  %p15_p3 = scmp.ge.s32.totalorder %s2621_s24, 4   ;;  %s4740_s18 = smov %s2546_s19 }
 0x33d   : > { %s4741_s19 = smov %s2550_s20  ;;  %s4742_s20 = smov %s2632_s27 }
 0x33e   : > { %s4743_s21 = smov %s2621_s24  ;;  %17 = sbr.rel (!%p15_p3) target bundleno = 3 (0x3), region = 75 }
 0x345   :  { %2182 = vsyncpa [#allocation3], 1 }
 0x346   :  { %2184 = vsyncpa [#allocation3 + $0x1], 1 }

</bundles_post_ra>
